<compile_context>
chip_gen: v7x
topology: tpu7x:2x2x1
jax: 0.10.0
libtpu: 0.0.40
codegen_flags: <defaults>
</compile_context>

<pallas_src>
import jax
import jax.numpy as jnp
from jax.experimental import pallas as pl
from jax.experimental.pallas import tpu as pltpu


def _round_up(x, m):
    return (x + m - 1) // m * m


# ---------------------------------------------------------------------------
# Fused Pallas kernel (all layers + FC + sigmoid, no grid)
# ---------------------------------------------------------------------------
def _make_fused_lstm_kernel(T, B, H, num_layers):
    """Builds the fused forward kernel for static shapes.

    Kernel refs (in order):
      x_ref                 : (T*B, D0)  time-major rows, row t*B + b == x[b, t]
      (w_ih, w_hh, b) * L   : (D_in,4H), (H,4H), (1,4H)   gate order [i, f, g, o]
      fc_w, fc_b            : (H, O), (1, O)
      out_ref               : (B, O)
    """

    def kernel(*refs):
        x_ref = refs[0]
        w_refs = refs[1:1 + 3 * num_layers]
        fc_w_ref = refs[1 + 3 * num_layers]
        fc_b_ref = refs[2 + 3 * num_layers]
        out_ref = refs[3 + 3 * num_layers]

        # Lane mask selecting the 'g' (cell-candidate) chunk of [i, f, g, o].
        # Hoisted: computed once, reused by every unrolled step of every layer.
        lane = jax.lax.broadcasted_iota(jnp.int32, (B, 4 * H), 1)
        g_mask = jnp.logical_and(lane >= 2 * H, lane < 3 * H)

        def lstm_cell(gx_t, h, c, w_hh):
            # gx_t already holds x_t @ W_ih + (b_ih + b_hh); only the recurrent
            # matmul sits on the serial critical path.
            gates = gx_t + jnp.dot(h, w_hh, preferred_element_type=jnp.float32)
            # Lane-dense activations: ONE tanh pass over the (B, 4H) block.
            #   i, f, o : sigmoid(x) = 0.5 * (tanh(x/2) + 1)
            #   g       : tanh(x)
            z = jnp.where(g_mask, gates, gates * 0.5)
            tz = jnp.tanh(z)
            act = jnp.where(g_mask, tz, (tz + 1.0) * 0.5)
            i_g = act[:, 0 * H:1 * H]
            f_g = act[:, 1 * H:2 * H]
            g_g = act[:, 2 * H:3 * H]
            o_g = act[:, 3 * H:4 * H]
            c_new = f_g * c + i_g * g_g
            h_new = o_g * jnp.tanh(c_new)
            return h_new, c_new

        layer_in = x_ref[...]                      # (T*B, D_in), time-major rows
        h = None
        for l in range(num_layers):
            w_ih = w_refs[3 * l][...]              # (D_in, 4H)
            w_hh = w_refs[3 * l + 1][...]          # (H, 4H)
            bias = w_refs[3 * l + 2][...]          # (1, 4H) = b_ih + b_hh

            # Hoisted input projection for ALL timesteps: one MXU call with
            # M = T*B, plus one bias broadcast per layer (not per step).
            gates_x = (
                jnp.dot(layer_in, w_ih, preferred_element_type=jnp.float32)
                + bias
            )                                       # (T*B, 4H)

            h = jnp.zeros((B, H), jnp.float32)
            c = jnp.zeros((B, H), jnp.float32)
            hs = []
            # Fully-unrolled recurrence (must stay sequential in t): static,
            # tile-aligned slices; no ref traffic for the carried state.
            for t in range(T):
                gx_t = gates_x[t * B:(t + 1) * B, :]
                h, c = lstm_cell(gx_t, h, c, w_hh)
                if l < num_layers - 1:
                    hs.append(h)
            if l < num_layers - 1:
                # Next layer consumes the whole hidden sequence; it never
                # leaves VMEM (no HBM round-trip between layers).
                layer_in = jnp.concatenate(hs, axis=0)   # (T*B, H)

        # FC + sigmoid on the LAST layer's FINAL hidden state only
        # (== out[:, -1, :] in the PyTorch module); nothing else is stored.
        logits = (
            jnp.dot(h, fc_w_ref[...], preferred_element_type=jnp.float32)
            + fc_b_ref[...]
        )
        out_ref[...] = jax.nn.sigmoid(logits)

    return kernel


# ---------------------------------------------------------------------------
# Wrapper
# ---------------------------------------------------------------------------
@jax.jit
def lstm_model_forward(x, params):
    """x: (B, T, D) batch-first, like the PyTorch module.  Returns (B, O)."""
    B, T, D = x.shape
    H = params["lstm"][0]["w_hh"].shape[0]
    O = params["fc_w"].shape[1]
    num_layers = len(params["lstm"])

    # Pad the batch to one full sublane tile (8 rows) so all in-kernel slices /
    # concatenations are (8, *)-aligned; pad rows are dropped below.
    B_pad = _round_up(B, 8)
    if B_pad != B:
        x = jnp.pad(x, ((0, B_pad - B), (0, 0), (0, 0)))

    # Time-major flattening on the (free) XLA side: row t*B_pad + b == x[b, t].
    x_tb = jnp.transpose(x, (1, 0, 2)).reshape(T * B_pad, D)

    flat_weights = []
    for layer in params["lstm"]:
        flat_weights += [layer["w_ih"], layer["w_hh"], layer["b"]]

    kernel = _make_fused_lstm_kernel(T, B_pad, H, num_layers)
    n_inputs = 1 + len(flat_weights) + 2
    vmem_spec = pl.BlockSpec(memory_space=pltpu.MemorySpace.VMEM)

    out_pad = pl.pallas_call(
        kernel,
        out_shape=jax.ShapeDtypeStruct((B_pad, O), jnp.float32),
        in_specs=[vmem_spec] * n_inputs,
        out_specs=pl.BlockSpec(memory_space=pltpu.MemorySpace.VMEM),
    )(x_tb, *flat_weights, params["fc_w"], params["fc_b"])
    return out_pad[:B]


# ---------------------------------------------------------------------------
# Deterministic parameter init (matches PyTorch LSTM/Linear default U(-k, k))
# ---------------------------------------------------------------------------
def init_params(key, input_dim, hidden_dim, output_dim, num_layers):
    layers = []
    bound = 1.0 / jnp.sqrt(hidden_dim)
    for layer_idx in range(num_layers):
        d_in = input_dim if layer_idx == 0 else hidden_dim
        key, k1, k2, k3, k4 = jax.random.split(key, 5)
        w_ih = jax.random.uniform(k1, (d_in, 4 * hidden_dim), jnp.float32, -bound, bound)
        w_hh = jax.random.uniform(k2, (hidden_dim, 4 * hidden_dim), jnp.float32, -bound, bound)
        b_ih = jax.random.uniform(k3, (4 * hidden_dim,), jnp.float32, -bound, bound)
        b_hh = jax.random.uniform(k4, (4 * hidden_dim,), jnp.float32, -bound, bound)
        layers.append({"w_ih": w_ih, "w_hh": w_hh, "b": (b_ih + b_hh)[None, :]})
    key, k5, k6 = jax.random.split(key, 3)
    fc_w = jax.random.uniform(k5, (hidden_dim, output_dim), jnp.float32, -bound, bound)
    fc_b = jax.random.uniform(k6, (output_dim,), jnp.float32, -bound, bound)[None, :]
    return {"lstm": layers, "fc_w": fc_w, "fc_b": fc_b}


# ---------------------------------------------------------------------------
# Pure-JAX reference (for correctness check)
# ---------------------------------------------------------------------------
def lstm_model_ref(x, params):
    B = x.shape[0]
    h_seq = x
    for layer in params["lstm"]:
        H = layer["w_hh"].shape[0]
        h = jnp.zeros((B, H), jnp.float32)
        c = jnp.zeros((B, H), jnp.float32)
        outs = []
        for t in range(h_seq.shape[1]):
            gates = h_seq[:, t, :] @ layer["w_ih"] + h @ layer["w_hh"] + layer["b"]
            i_g = jax.nn.sigmoid(gates[:, :H])
            f_g = jax.nn.sigmoid(gates[:, H:2 * H])
            g_g = jnp.tanh(gates[:, 2 * H:3 * H])
            o_g = jax.nn.sigmoid(gates[:, 3 * H:])
            c = f_g * c + i_g * g_g
            h = o_g * jnp.tanh(c)
            outs.append(h)
        h_seq = jnp.stack(outs, axis=1)
    return jax.nn.sigmoid(h_seq[:, -1, :] @ params["fc_w"] + params["fc_b"])


# ---------------------------------------------------------------------------
if __name__ == "__main__":
    # Small shapes consistent with the module: batch=2, seq=8,
    # input_dim=4, hidden_dim=32, output_dim=4, num_layers=2.
    B, T, D, H, O, L = 2, 8, 4, 32, 4, 2

    key = jax.random.PRNGKey(0)
    key, kx = jax.random.split(key)
    x = jax.random.normal(kx, (B, T, D), jnp.float32)

    params = init_params(key, D, H, O, L)

    out = jax.block_until_ready(lstm_model_forward(x, params))
    ref = lstm_model_ref(x, params)

    assert out.shape == (B, O), out.shape
    assert jnp.allclose(out, ref, atol=1e-4, rtol=1e-4), (out, ref)

    print("KERNEL_OK")
</pallas_src>

<mosaic_0001>
module attributes {stable_mosaic.version = 11 : i64} {
  func.func @kernel(%arg0: memref<64x4xf32, #tpu.memory_space<vmem>>, %arg1: memref<4x128xf32, #tpu.memory_space<vmem>>, %arg2: memref<32x128xf32, #tpu.memory_space<vmem>>, %arg3: memref<1x128xf32, #tpu.memory_space<vmem>>, %arg4: memref<32x128xf32, #tpu.memory_space<vmem>>, %arg5: memref<32x128xf32, #tpu.memory_space<vmem>>, %arg6: memref<1x128xf32, #tpu.memory_space<vmem>>, %arg7: memref<32x4xf32, #tpu.memory_space<vmem>>, %arg8: memref<1x4xf32, #tpu.memory_space<vmem>>, %arg9: memref<8x4xf32, #tpu.memory_space<vmem>>) attributes {dimension_semantics = [], scalar_prefetch = 0 : i64, scratch_operands = 0 : i64, tpu.core_type = #tpu.core_type<tc>} {
    %0 = tpu.iota {dimensions = array<i32: 1>} : vector<8x128xi32>
    %c64_i32 = arith.constant 64 : i32
    %1 = vector.broadcast %c64_i32 : i32 to vector<8x128xi32>
    %2 = arith.cmpi sge, %0, %1 : vector<8x128xi32>
    %c96_i32 = arith.constant 96 : i32
    %3 = vector.broadcast %c96_i32 : i32 to vector<8x128xi32>
    %4 = arith.cmpi slt, %0, %3 : vector<8x128xi32>
    %5 = arith.andi %2, %4 : vector<8x128xi1>
    %c0 = arith.constant 0 : index
    %c0_0 = arith.constant 0 : index
    %6 = vector.load %arg0[%c0, %c0_0] : memref<64x4xf32, #tpu.memory_space<vmem>>, vector<64x4xf32>
    %c0_1 = arith.constant 0 : index
    %c0_2 = arith.constant 0 : index
    %7 = vector.load %arg1[%c0_1, %c0_2] : memref<4x128xf32, #tpu.memory_space<vmem>>, vector<4x128xf32>
    %c0_3 = arith.constant 0 : index
    %c0_4 = arith.constant 0 : index
    %8 = vector.load %arg2[%c0_3, %c0_4] : memref<32x128xf32, #tpu.memory_space<vmem>>, vector<32x128xf32>
    %c0_5 = arith.constant 0 : index
    %c0_6 = arith.constant 0 : index
    %9 = vector.load %arg3[%c0_5, %c0_6] : memref<1x128xf32, #tpu.memory_space<vmem>>, vector<1x128xf32>
    %cst = arith.constant dense<0.000000e+00> : vector<64x128xf32>
    %10 = tpu.matmul %6, %7, %cst {dimension_numbers = #tpu.dot_dimension_numbers<[1], [0], [0], [1], [0, 0, 1, 1], [], []>} : vector<64x4xf32>, vector<4x128xf32>, vector<64x128xf32> -> vector<64x128xf32>
    %11 = vector.broadcast %9 : vector<1x128xf32> to vector<64x128xf32>
    %12 = arith.addf %10, %11 : vector<64x128xf32>
    %cst_7 = arith.constant 0.000000e+00 : f32
    %13 = vector.broadcast %cst_7 : f32 to vector<8x32xf32>
    %cst_8 = arith.constant 0.000000e+00 : f32
    %14 = vector.broadcast %cst_8 : f32 to vector<8x32xf32>
    %15 = vector.extract_strided_slice %12 {offsets = [0, 0], sizes = [8, 128], strides = [1, 1]} : vector<64x128xf32> to vector<8x128xf32>
    %cst_9 = arith.constant dense<0.000000e+00> : vector<8x128xf32>
    %16 = tpu.matmul %13, %8, %cst_9 {dimension_numbers = #tpu.dot_dimension_numbers<[1], [0], [0], [1], [0, 0, 1, 1], [], []>} : vector<8x32xf32>, vector<32x128xf32>, vector<8x128xf32> -> vector<8x128xf32>
    %17 = arith.addf %15, %16 : vector<8x128xf32>
    %cst_10 = arith.constant 5.000000e-01 : f32
    %18 = vector.broadcast %cst_10 : f32 to vector<8x128xf32>
    %19 = arith.mulf %17, %18 : vector<8x128xf32>
    %20 = arith.select %5, %17, %19 : vector<8x128xi1>, vector<8x128xf32>
    %21 = math.tanh %20 : vector<8x128xf32>
    %cst_11 = arith.constant 1.000000e+00 : f32
    %22 = vector.broadcast %cst_11 : f32 to vector<8x128xf32>
    %23 = arith.addf %21, %22 : vector<8x128xf32>
    %cst_12 = arith.constant 5.000000e-01 : f32
    %24 = vector.broadcast %cst_12 : f32 to vector<8x128xf32>
    %25 = arith.mulf %23, %24 : vector<8x128xf32>
    %26 = arith.select %5, %21, %25 : vector<8x128xi1>, vector<8x128xf32>
    %27 = vector.extract_strided_slice %26 {offsets = [0, 0], sizes = [8, 32], strides = [1, 1]} : vector<8x128xf32> to vector<8x32xf32>
    %28 = vector.extract_strided_slice %26 {offsets = [0, 32], sizes = [8, 32], strides = [1, 1]} : vector<8x128xf32> to vector<8x32xf32>
    %29 = vector.extract_strided_slice %26 {offsets = [0, 64], sizes = [8, 32], strides = [1, 1]} : vector<8x128xf32> to vector<8x32xf32>
    %30 = vector.extract_strided_slice %26 {offsets = [0, 96], sizes = [8, 32], strides = [1, 1]} : vector<8x128xf32> to vector<8x32xf32>
    %31 = arith.mulf %28, %14 : vector<8x32xf32>
    %32 = arith.mulf %27, %29 : vector<8x32xf32>
    %33 = arith.addf %31, %32 : vector<8x32xf32>
    %34 = math.tanh %33 : vector<8x32xf32>
    %35 = arith.mulf %30, %34 : vector<8x32xf32>
    %36 = vector.extract_strided_slice %12 {offsets = [8, 0], sizes = [8, 128], strides = [1, 1]} : vector<64x128xf32> to vector<8x128xf32>
    %cst_13 = arith.constant dense<0.000000e+00> : vector<8x128xf32>
    %37 = tpu.matmul %35, %8, %cst_13 {dimension_numbers = #tpu.dot_dimension_numbers<[1], [0], [0], [1], [0, 0, 1, 1], [], []>} : vector<8x32xf32>, vector<32x128xf32>, vector<8x128xf32> -> vector<8x128xf32>
    %38 = arith.addf %36, %37 : vector<8x128xf32>
    %cst_14 = arith.constant 5.000000e-01 : f32
    %39 = vector.broadcast %cst_14 : f32 to vector<8x128xf32>
    %40 = arith.mulf %38, %39 : vector<8x128xf32>
    %41 = arith.select %5, %38, %40 : vector<8x128xi1>, vector<8x128xf32>
    %42 = math.tanh %41 : vector<8x128xf32>
    %cst_15 = arith.constant 1.000000e+00 : f32
    %43 = vector.broadcast %cst_15 : f32 to vector<8x128xf32>
    %44 = arith.addf %42, %43 : vector<8x128xf32>
    %cst_16 = arith.constant 5.000000e-01 : f32
    %45 = vector.broadcast %cst_16 : f32 to vector<8x128xf32>
    %46 = arith.mulf %44, %45 : vector<8x128xf32>
    %47 = arith.select %5, %42, %46 : vector<8x128xi1>, vector<8x128xf32>
    %48 = vector.extract_strided_slice %47 {offsets = [0, 0], sizes = [8, 32], strides = [1, 1]} : vector<8x128xf32> to vector<8x32xf32>
    %49 = vector.extract_strided_slice %47 {offsets = [0, 32], sizes = [8, 32], strides = [1, 1]} : vector<8x128xf32> to vector<8x32xf32>
    %50 = vector.extract_strided_slice %47 {offsets = [0, 64], sizes = [8, 32], strides = [1, 1]} : vector<8x128xf32> to vector<8x32xf32>
    %51 = vector.extract_strided_slice %47 {offsets = [0, 96], sizes = [8, 32], strides = [1, 1]} : vector<8x128xf32> to vector<8x32xf32>
    %52 = arith.mulf %49, %33 : vector<8x32xf32>
    %53 = arith.mulf %48, %50 : vector<8x32xf32>
    %54 = arith.addf %52, %53 : vector<8x32xf32>
    %55 = math.tanh %54 : vector<8x32xf32>
    %56 = arith.mulf %51, %55 : vector<8x32xf32>
    %57 = vector.extract_strided_slice %12 {offsets = [16, 0], sizes = [8, 128], strides = [1, 1]} : vector<64x128xf32> to vector<8x128xf32>
    %cst_17 = arith.constant dense<0.000000e+00> : vector<8x128xf32>
    %58 = tpu.matmul %56, %8, %cst_17 {dimension_numbers = #tpu.dot_dimension_numbers<[1], [0], [0], [1], [0, 0, 1, 1], [], []>} : vector<8x32xf32>, vector<32x128xf32>, vector<8x128xf32> -> vector<8x128xf32>
    %59 = arith.addf %57, %58 : vector<8x128xf32>
    %cst_18 = arith.constant 5.000000e-01 : f32
    %60 = vector.broadcast %cst_18 : f32 to vector<8x128xf32>
    %61 = arith.mulf %59, %60 : vector<8x128xf32>
    %62 = arith.select %5, %59, %61 : vector<8x128xi1>, vector<8x128xf32>
    %63 = math.tanh %62 : vector<8x128xf32>
    %cst_19 = arith.constant 1.000000e+00 : f32
    %64 = vector.broadcast %cst_19 : f32 to vector<8x128xf32>
    %65 = arith.addf %63, %64 : vector<8x128xf32>
    %cst_20 = arith.constant 5.000000e-01 : f32
    %66 = vector.broadcast %cst_20 : f32 to vector<8x128xf32>
    %67 = arith.mulf %65, %66 : vector<8x128xf32>
    %68 = arith.select %5, %63, %67 : vector<8x128xi1>, vector<8x128xf32>
    %69 = vector.extract_strided_slice %68 {offsets = [0, 0], sizes = [8, 32], strides = [1, 1]} : vector<8x128xf32> to vector<8x32xf32>
    %70 = vector.extract_strided_slice %68 {offsets = [0, 32], sizes = [8, 32], strides = [1, 1]} : vector<8x128xf32> to vector<8x32xf32>
    %71 = vector.extract_strided_slice %68 {offsets = [0, 64], sizes = [8, 32], strides = [1, 1]} : vector<8x128xf32> to vector<8x32xf32>
    %72 = vector.extract_strided_slice %68 {offsets = [0, 96], sizes = [8, 32], strides = [1, 1]} : vector<8x128xf32> to vector<8x32xf32>
    %73 = arith.mulf %70, %54 : vector<8x32xf32>
    %74 = arith.mulf %69, %71 : vector<8x32xf32>
    %75 = arith.addf %73, %74 : vector<8x32xf32>
    %76 = math.tanh %75 : vector<8x32xf32>
    %77 = arith.mulf %72, %76 : vector<8x32xf32>
    %78 = vector.extract_strided_slice %12 {offsets = [24, 0], sizes = [8, 128], strides = [1, 1]} : vector<64x128xf32> to vector<8x128xf32>
    %cst_21 = arith.constant dense<0.000000e+00> : vector<8x128xf32>
    %79 = tpu.matmul %77, %8, %cst_21 {dimension_numbers = #tpu.dot_dimension_numbers<[1], [0], [0], [1], [0, 0, 1, 1], [], []>} : vector<8x32xf32>, vector<32x128xf32>, vector<8x128xf32> -> vector<8x128xf32>
    %80 = arith.addf %78, %79 : vector<8x128xf32>
    %cst_22 = arith.constant 5.000000e-01 : f32
    %81 = vector.broadcast %cst_22 : f32 to vector<8x128xf32>
    %82 = arith.mulf %80, %81 : vector<8x128xf32>
    %83 = arith.select %5, %80, %82 : vector<8x128xi1>, vector<8x128xf32>
    %84 = math.tanh %83 : vector<8x128xf32>
    %cst_23 = arith.constant 1.000000e+00 : f32
    %85 = vector.broadcast %cst_23 : f32 to vector<8x128xf32>
    %86 = arith.addf %84, %85 : vector<8x128xf32>
    %cst_24 = arith.constant 5.000000e-01 : f32
    %87 = vector.broadcast %cst_24 : f32 to vector<8x128xf32>
    %88 = arith.mulf %86, %87 : vector<8x128xf32>
    %89 = arith.select %5, %84, %88 : vector<8x128xi1>, vector<8x128xf32>
    %90 = vector.extract_strided_slice %89 {offsets = [0, 0], sizes = [8, 32], strides = [1, 1]} : vector<8x128xf32> to vector<8x32xf32>
    %91 = vector.extract_strided_slice %89 {offsets = [0, 32], sizes = [8, 32], strides = [1, 1]} : vector<8x128xf32> to vector<8x32xf32>
    %92 = vector.extract_strided_slice %89 {offsets = [0, 64], sizes = [8, 32], strides = [1, 1]} : vector<8x128xf32> to vector<8x32xf32>
    %93 = vector.extract_strided_slice %89 {offsets = [0, 96], sizes = [8, 32], strides = [1, 1]} : vector<8x128xf32> to vector<8x32xf32>
    %94 = arith.mulf %91, %75 : vector<8x32xf32>
    %95 = arith.mulf %90, %92 : vector<8x32xf32>
    %96 = arith.addf %94, %95 : vector<8x32xf32>
    %97 = math.tanh %96 : vector<8x32xf32>
    %98 = arith.mulf %93, %97 : vector<8x32xf32>
    %99 = vector.extract_strided_slice %12 {offsets = [32, 0], sizes = [8, 128], strides = [1, 1]} : vector<64x128xf32> to vector<8x128xf32>
    %cst_25 = arith.constant dense<0.000000e+00> : vector<8x128xf32>
    %100 = tpu.matmul %98, %8, %cst_25 {dimension_numbers = #tpu.dot_dimension_numbers<[1], [0], [0], [1], [0, 0, 1, 1], [], []>} : vector<8x32xf32>, vector<32x128xf32>, vector<8x128xf32> -> vector<8x128xf32>
    %101 = arith.addf %99, %100 : vector<8x128xf32>
    %cst_26 = arith.constant 5.000000e-01 : f32
    %102 = vector.broadcast %cst_26 : f32 to vector<8x128xf32>
    %103 = arith.mulf %101, %102 : vector<8x128xf32>
    %104 = arith.select %5, %101, %103 : vector<8x128xi1>, vector<8x128xf32>
    %105 = math.tanh %104 : vector<8x128xf32>
    %cst_27 = arith.constant 1.000000e+00 : f32
    %106 = vector.broadcast %cst_27 : f32 to vector<8x128xf32>
    %107 = arith.addf %105, %106 : vector<8x128xf32>
    %cst_28 = arith.constant 5.000000e-01 : f32
    %108 = vector.broadcast %cst_28 : f32 to vector<8x128xf32>
    %109 = arith.mulf %107, %108 : vector<8x128xf32>
    %110 = arith.select %5, %105, %109 : vector<8x128xi1>, vector<8x128xf32>
    %111 = vector.extract_strided_slice %110 {offsets = [0, 0], sizes = [8, 32], strides = [1, 1]} : vector<8x128xf32> to vector<8x32xf32>
    %112 = vector.extract_strided_slice %110 {offsets = [0, 32], sizes = [8, 32], strides = [1, 1]} : vector<8x128xf32> to vector<8x32xf32>
    %113 = vector.extract_strided_slice %110 {offsets = [0, 64], sizes = [8, 32], strides = [1, 1]} : vector<8x128xf32> to vector<8x32xf32>
    %114 = vector.extract_strided_slice %110 {offsets = [0, 96], sizes = [8, 32], strides = [1, 1]} : vector<8x128xf32> to vector<8x32xf32>
    %115 = arith.mulf %112, %96 : vector<8x32xf32>
    %116 = arith.mulf %111, %113 : vector<8x32xf32>
    %117 = arith.addf %115, %116 : vector<8x32xf32>
    %118 = math.tanh %117 : vector<8x32xf32>
    %119 = arith.mulf %114, %118 : vector<8x32xf32>
    %120 = vector.extract_strided_slice %12 {offsets = [40, 0], sizes = [8, 128], strides = [1, 1]} : vector<64x128xf32> to vector<8x128xf32>
    %cst_29 = arith.constant dense<0.000000e+00> : vector<8x128xf32>
    %121 = tpu.matmul %119, %8, %cst_29 {dimension_numbers = #tpu.dot_dimension_numbers<[1], [0], [0], [1], [0, 0, 1, 1], [], []>} : vector<8x32xf32>, vector<32x128xf32>, vector<8x128xf32> -> vector<8x128xf32>
    %122 = arith.addf %120, %121 : vector<8x128xf32>
    %cst_30 = arith.constant 5.000000e-01 : f32
    %123 = vector.broadcast %cst_30 : f32 to vector<8x128xf32>
    %124 = arith.mulf %122, %123 : vector<8x128xf32>
    %125 = arith.select %5, %122, %124 : vector<8x128xi1>, vector<8x128xf32>
    %126 = math.tanh %125 : vector<8x128xf32>
    %cst_31 = arith.constant 1.000000e+00 : f32
    %127 = vector.broadcast %cst_31 : f32 to vector<8x128xf32>
    %128 = arith.addf %126, %127 : vector<8x128xf32>
    %cst_32 = arith.constant 5.000000e-01 : f32
    %129 = vector.broadcast %cst_32 : f32 to vector<8x128xf32>
    %130 = arith.mulf %128, %129 : vector<8x128xf32>
    %131 = arith.select %5, %126, %130 : vector<8x128xi1>, vector<8x128xf32>
    %132 = vector.extract_strided_slice %131 {offsets = [0, 0], sizes = [8, 32], strides = [1, 1]} : vector<8x128xf32> to vector<8x32xf32>
    %133 = vector.extract_strided_slice %131 {offsets = [0, 32], sizes = [8, 32], strides = [1, 1]} : vector<8x128xf32> to vector<8x32xf32>
    %134 = vector.extract_strided_slice %131 {offsets = [0, 64], sizes = [8, 32], strides = [1, 1]} : vector<8x128xf32> to vector<8x32xf32>
    %135 = vector.extract_strided_slice %131 {offsets = [0, 96], sizes = [8, 32], strides = [1, 1]} : vector<8x128xf32> to vector<8x32xf32>
    %136 = arith.mulf %133, %117 : vector<8x32xf32>
    %137 = arith.mulf %132, %134 : vector<8x32xf32>
    %138 = arith.addf %136, %137 : vector<8x32xf32>
    %139 = math.tanh %138 : vector<8x32xf32>
    %140 = arith.mulf %135, %139 : vector<8x32xf32>
    %141 = vector.extract_strided_slice %12 {offsets = [48, 0], sizes = [8, 128], strides = [1, 1]} : vector<64x128xf32> to vector<8x128xf32>
    %cst_33 = arith.constant dense<0.000000e+00> : vector<8x128xf32>
    %142 = tpu.matmul %140, %8, %cst_33 {dimension_numbers = #tpu.dot_dimension_numbers<[1], [0], [0], [1], [0, 0, 1, 1], [], []>} : vector<8x32xf32>, vector<32x128xf32>, vector<8x128xf32> -> vector<8x128xf32>
    %143 = arith.addf %141, %142 : vector<8x128xf32>
    %cst_34 = arith.constant 5.000000e-01 : f32
    %144 = vector.broadcast %cst_34 : f32 to vector<8x128xf32>
    %145 = arith.mulf %143, %144 : vector<8x128xf32>
    %146 = arith.select %5, %143, %145 : vector<8x128xi1>, vector<8x128xf32>
    %147 = math.tanh %146 : vector<8x128xf32>
    %cst_35 = arith.constant 1.000000e+00 : f32
    %148 = vector.broadcast %cst_35 : f32 to vector<8x128xf32>
    %149 = arith.addf %147, %148 : vector<8x128xf32>
    %cst_36 = arith.constant 5.000000e-01 : f32
    %150 = vector.broadcast %cst_36 : f32 to vector<8x128xf32>
    %151 = arith.mulf %149, %150 : vector<8x128xf32>
    %152 = arith.select %5, %147, %151 : vector<8x128xi1>, vector<8x128xf32>
    %153 = vector.extract_strided_slice %152 {offsets = [0, 0], sizes = [8, 32], strides = [1, 1]} : vector<8x128xf32> to vector<8x32xf32>
    %154 = vector.extract_strided_slice %152 {offsets = [0, 32], sizes = [8, 32], strides = [1, 1]} : vector<8x128xf32> to vector<8x32xf32>
    %155 = vector.extract_strided_slice %152 {offsets = [0, 64], sizes = [8, 32], strides = [1, 1]} : vector<8x128xf32> to vector<8x32xf32>
    %156 = vector.extract_strided_slice %152 {offsets = [0, 96], sizes = [8, 32], strides = [1, 1]} : vector<8x128xf32> to vector<8x32xf32>
    %157 = arith.mulf %154, %138 : vector<8x32xf32>
    %158 = arith.mulf %153, %155 : vector<8x32xf32>
    %159 = arith.addf %157, %158 : vector<8x32xf32>
    %160 = math.tanh %159 : vector<8x32xf32>
    %161 = arith.mulf %156, %160 : vector<8x32xf32>
    %162 = vector.extract_strided_slice %12 {offsets = [56, 0], sizes = [8, 128], strides = [1, 1]} : vector<64x128xf32> to vector<8x128xf32>
    %cst_37 = arith.constant dense<0.000000e+00> : vector<8x128xf32>
    %163 = tpu.matmul %161, %8, %cst_37 {dimension_numbers = #tpu.dot_dimension_numbers<[1], [0], [0], [1], [0, 0, 1, 1], [], []>} : vector<8x32xf32>, vector<32x128xf32>, vector<8x128xf32> -> vector<8x128xf32>
    %164 = arith.addf %162, %163 : vector<8x128xf32>
    %cst_38 = arith.constant 5.000000e-01 : f32
    %165 = vector.broadcast %cst_38 : f32 to vector<8x128xf32>
    %166 = arith.mulf %164, %165 : vector<8x128xf32>
    %167 = arith.select %5, %164, %166 : vector<8x128xi1>, vector<8x128xf32>
    %168 = math.tanh %167 : vector<8x128xf32>
    %cst_39 = arith.constant 1.000000e+00 : f32
    %169 = vector.broadcast %cst_39 : f32 to vector<8x128xf32>
    %170 = arith.addf %168, %169 : vector<8x128xf32>
    %cst_40 = arith.constant 5.000000e-01 : f32
    %171 = vector.broadcast %cst_40 : f32 to vector<8x128xf32>
    %172 = arith.mulf %170, %171 : vector<8x128xf32>
    %173 = arith.select %5, %168, %172 : vector<8x128xi1>, vector<8x128xf32>
    %174 = vector.extract_strided_slice %173 {offsets = [0, 0], sizes = [8, 32], strides = [1, 1]} : vector<8x128xf32> to vector<8x32xf32>
    %175 = vector.extract_strided_slice %173 {offsets = [0, 32], sizes = [8, 32], strides = [1, 1]} : vector<8x128xf32> to vector<8x32xf32>
    %176 = vector.extract_strided_slice %173 {offsets = [0, 64], sizes = [8, 32], strides = [1, 1]} : vector<8x128xf32> to vector<8x32xf32>
    %177 = vector.extract_strided_slice %173 {offsets = [0, 96], sizes = [8, 32], strides = [1, 1]} : vector<8x128xf32> to vector<8x32xf32>
    %178 = arith.mulf %175, %159 : vector<8x32xf32>
    %179 = arith.mulf %174, %176 : vector<8x32xf32>
    %180 = arith.addf %178, %179 : vector<8x32xf32>
    %181 = math.tanh %180 : vector<8x32xf32>
    %182 = arith.mulf %177, %181 : vector<8x32xf32>
    %183 = tpu.concatenate %35, %56, %77, %98, %119, %140, %161, %182 in 0 : vector<8x32xf32>, vector<8x32xf32>, vector<8x32xf32>, vector<8x32xf32>, vector<8x32xf32>, vector<8x32xf32>, vector<8x32xf32>, vector<8x32xf32> -> vector<64x32xf32>
    %c0_41 = arith.constant 0 : index
    %c0_42 = arith.constant 0 : index
    %184 = vector.load %arg4[%c0_41, %c0_42] : memref<32x128xf32, #tpu.memory_space<vmem>>, vector<32x128xf32>
    %c0_43 = arith.constant 0 : index
    %c0_44 = arith.constant 0 : index
    %185 = vector.load %arg5[%c0_43, %c0_44] : memref<32x128xf32, #tpu.memory_space<vmem>>, vector<32x128xf32>
    %c0_45 = arith.constant 0 : index
    %c0_46 = arith.constant 0 : index
    %186 = vector.load %arg6[%c0_45, %c0_46] : memref<1x128xf32, #tpu.memory_space<vmem>>, vector<1x128xf32>
    %cst_47 = arith.constant dense<0.000000e+00> : vector<64x128xf32>
    %187 = tpu.matmul %183, %184, %cst_47 {dimension_numbers = #tpu.dot_dimension_numbers<[1], [0], [0], [1], [0, 0, 1, 1], [], []>} : vector<64x32xf32>, vector<32x128xf32>, vector<64x128xf32> -> vector<64x128xf32>
    %188 = vector.broadcast %186 : vector<1x128xf32> to vector<64x128xf32>
    %189 = arith.addf %187, %188 : vector<64x128xf32>
    %cst_48 = arith.constant 0.000000e+00 : f32
    %190 = vector.broadcast %cst_48 : f32 to vector<8x32xf32>
    %cst_49 = arith.constant 0.000000e+00 : f32
    %191 = vector.broadcast %cst_49 : f32 to vector<8x32xf32>
    %192 = vector.extract_strided_slice %189 {offsets = [0, 0], sizes = [8, 128], strides = [1, 1]} : vector<64x128xf32> to vector<8x128xf32>
    %cst_50 = arith.constant dense<0.000000e+00> : vector<8x128xf32>
    %193 = tpu.matmul %190, %185, %cst_50 {dimension_numbers = #tpu.dot_dimension_numbers<[1], [0], [0], [1], [0, 0, 1, 1], [], []>} : vector<8x32xf32>, vector<32x128xf32>, vector<8x128xf32> -> vector<8x128xf32>
    %194 = arith.addf %192, %193 : vector<8x128xf32>
    %cst_51 = arith.constant 5.000000e-01 : f32
    %195 = vector.broadcast %cst_51 : f32 to vector<8x128xf32>
    %196 = arith.mulf %194, %195 : vector<8x128xf32>
    %197 = arith.select %5, %194, %196 : vector<8x128xi1>, vector<8x128xf32>
    %198 = math.tanh %197 : vector<8x128xf32>
    %cst_52 = arith.constant 1.000000e+00 : f32
    %199 = vector.broadcast %cst_52 : f32 to vector<8x128xf32>
    %200 = arith.addf %198, %199 : vector<8x128xf32>
    %cst_53 = arith.constant 5.000000e-01 : f32
    %201 = vector.broadcast %cst_53 : f32 to vector<8x128xf32>
    %202 = arith.mulf %200, %201 : vector<8x128xf32>
    %203 = arith.select %5, %198, %202 : vector<8x128xi1>, vector<8x128xf32>
    %204 = vector.extract_strided_slice %203 {offsets = [0, 0], sizes = [8, 32], strides = [1, 1]} : vector<8x128xf32> to vector<8x32xf32>
    %205 = vector.extract_strided_slice %203 {offsets = [0, 32], sizes = [8, 32], strides = [1, 1]} : vector<8x128xf32> to vector<8x32xf32>
    %206 = vector.extract_strided_slice %203 {offsets = [0, 64], sizes = [8, 32], strides = [1, 1]} : vector<8x128xf32> to vector<8x32xf32>
    %207 = vector.extract_strided_slice %203 {offsets = [0, 96], sizes = [8, 32], strides = [1, 1]} : vector<8x128xf32> to vector<8x32xf32>
    %208 = arith.mulf %205, %191 : vector<8x32xf32>
    %209 = arith.mulf %204, %206 : vector<8x32xf32>
    %210 = arith.addf %208, %209 : vector<8x32xf32>
    %211 = math.tanh %210 : vector<8x32xf32>
    %212 = arith.mulf %207, %211 : vector<8x32xf32>
    %213 = vector.extract_strided_slice %189 {offsets = [8, 0], sizes = [8, 128], strides = [1, 1]} : vector<64x128xf32> to vector<8x128xf32>
    %cst_54 = arith.constant dense<0.000000e+00> : vector<8x128xf32>
    %214 = tpu.matmul %212, %185, %cst_54 {dimension_numbers = #tpu.dot_dimension_numbers<[1], [0], [0], [1], [0, 0, 1, 1], [], []>} : vector<8x32xf32>, vector<32x128xf32>, vector<8x128xf32> -> vector<8x128xf32>
    %215 = arith.addf %213, %214 : vector<8x128xf32>
    %cst_55 = arith.constant 5.000000e-01 : f32
    %216 = vector.broadcast %cst_55 : f32 to vector<8x128xf32>
    %217 = arith.mulf %215, %216 : vector<8x128xf32>
    %218 = arith.select %5, %215, %217 : vector<8x128xi1>, vector<8x128xf32>
    %219 = math.tanh %218 : vector<8x128xf32>
    %cst_56 = arith.constant 1.000000e+00 : f32
    %220 = vector.broadcast %cst_56 : f32 to vector<8x128xf32>
    %221 = arith.addf %219, %220 : vector<8x128xf32>
    %cst_57 = arith.constant 5.000000e-01 : f32
    %222 = vector.broadcast %cst_57 : f32 to vector<8x128xf32>
    %223 = arith.mulf %221, %222 : vector<8x128xf32>
    %224 = arith.select %5, %219, %223 : vector<8x128xi1>, vector<8x128xf32>
    %225 = vector.extract_strided_slice %224 {offsets = [0, 0], sizes = [8, 32], strides = [1, 1]} : vector<8x128xf32> to vector<8x32xf32>
    %226 = vector.extract_strided_slice %224 {offsets = [0, 32], sizes = [8, 32], strides = [1, 1]} : vector<8x128xf32> to vector<8x32xf32>
    %227 = vector.extract_strided_slice %224 {offsets = [0, 64], sizes = [8, 32], strides = [1, 1]} : vector<8x128xf32> to vector<8x32xf32>
    %228 = vector.extract_strided_slice %224 {offsets = [0, 96], sizes = [8, 32], strides = [1, 1]} : vector<8x128xf32> to vector<8x32xf32>
    %229 = arith.mulf %226, %210 : vector<8x32xf32>
    %230 = arith.mulf %225, %227 : vector<8x32xf32>
    %231 = arith.addf %229, %230 : vector<8x32xf32>
    %232 = math.tanh %231 : vector<8x32xf32>
    %233 = arith.mulf %228, %232 : vector<8x32xf32>
    %234 = vector.extract_strided_slice %189 {offsets = [16, 0], sizes = [8, 128], strides = [1, 1]} : vector<64x128xf32> to vector<8x128xf32>
    %cst_58 = arith.constant dense<0.000000e+00> : vector<8x128xf32>
    %235 = tpu.matmul %233, %185, %cst_58 {dimension_numbers = #tpu.dot_dimension_numbers<[1], [0], [0], [1], [0, 0, 1, 1], [], []>} : vector<8x32xf32>, vector<32x128xf32>, vector<8x128xf32> -> vector<8x128xf32>
    %236 = arith.addf %234, %235 : vector<8x128xf32>
    %cst_59 = arith.constant 5.000000e-01 : f32
    %237 = vector.broadcast %cst_59 : f32 to vector<8x128xf32>
    %238 = arith.mulf %236, %237 : vector<8x128xf32>
    %239 = arith.select %5, %236, %238 : vector<8x128xi1>, vector<8x128xf32>
    %240 = math.tanh %239 : vector<8x128xf32>
    %cst_60 = arith.constant 1.000000e+00 : f32
    %241 = vector.broadcast %cst_60 : f32 to vector<8x128xf32>
    %242 = arith.addf %240, %241 : vector<8x128xf32>
    %cst_61 = arith.constant 5.000000e-01 : f32
    %243 = vector.broadcast %cst_61 : f32 to vector<8x128xf32>
    %244 = arith.mulf %242, %243 : vector<8x128xf32>
    %245 = arith.select %5, %240, %244 : vector<8x128xi1>, vector<8x128xf32>
    %246 = vector.extract_strided_slice %245 {offsets = [0, 0], sizes = [8, 32], strides = [1, 1]} : vector<8x128xf32> to vector<8x32xf32>
    %247 = vector.extract_strided_slice %245 {offsets = [0, 32], sizes = [8, 32], strides = [1, 1]} : vector<8x128xf32> to vector<8x32xf32>
    %248 = vector.extract_strided_slice %245 {offsets = [0, 64], sizes = [8, 32], strides = [1, 1]} : vector<8x128xf32> to vector<8x32xf32>
    %249 = vector.extract_strided_slice %245 {offsets = [0, 96], sizes = [8, 32], strides = [1, 1]} : vector<8x128xf32> to vector<8x32xf32>
    %250 = arith.mulf %247, %231 : vector<8x32xf32>
    %251 = arith.mulf %246, %248 : vector<8x32xf32>
    %252 = arith.addf %250, %251 : vector<8x32xf32>
    %253 = math.tanh %252 : vector<8x32xf32>
    %254 = arith.mulf %249, %253 : vector<8x32xf32>
    %255 = vector.extract_strided_slice %189 {offsets = [24, 0], sizes = [8, 128], strides = [1, 1]} : vector<64x128xf32> to vector<8x128xf32>
    %cst_62 = arith.constant dense<0.000000e+00> : vector<8x128xf32>
    %256 = tpu.matmul %254, %185, %cst_62 {dimension_numbers = #tpu.dot_dimension_numbers<[1], [0], [0], [1], [0, 0, 1, 1], [], []>} : vector<8x32xf32>, vector<32x128xf32>, vector<8x128xf32> -> vector<8x128xf32>
    %257 = arith.addf %255, %256 : vector<8x128xf32>
    %cst_63 = arith.constant 5.000000e-01 : f32
    %258 = vector.broadcast %cst_63 : f32 to vector<8x128xf32>
    %259 = arith.mulf %257, %258 : vector<8x128xf32>
    %260 = arith.select %5, %257, %259 : vector<8x128xi1>, vector<8x128xf32>
    %261 = math.tanh %260 : vector<8x128xf32>
    %cst_64 = arith.constant 1.000000e+00 : f32
    %262 = vector.broadcast %cst_64 : f32 to vector<8x128xf32>
    %263 = arith.addf %261, %262 : vector<8x128xf32>
    %cst_65 = arith.constant 5.000000e-01 : f32
    %264 = vector.broadcast %cst_65 : f32 to vector<8x128xf32>
    %265 = arith.mulf %263, %264 : vector<8x128xf32>
    %266 = arith.select %5, %261, %265 : vector<8x128xi1>, vector<8x128xf32>
    %267 = vector.extract_strided_slice %266 {offsets = [0, 0], sizes = [8, 32], strides = [1, 1]} : vector<8x128xf32> to vector<8x32xf32>
    %268 = vector.extract_strided_slice %266 {offsets = [0, 32], sizes = [8, 32], strides = [1, 1]} : vector<8x128xf32> to vector<8x32xf32>
    %269 = vector.extract_strided_slice %266 {offsets = [0, 64], sizes = [8, 32], strides = [1, 1]} : vector<8x128xf32> to vector<8x32xf32>
    %270 = vector.extract_strided_slice %266 {offsets = [0, 96], sizes = [8, 32], strides = [1, 1]} : vector<8x128xf32> to vector<8x32xf32>
    %271 = arith.mulf %268, %252 : vector<8x32xf32>
    %272 = arith.mulf %267, %269 : vector<8x32xf32>
    %273 = arith.addf %271, %272 : vector<8x32xf32>
    %274 = math.tanh %273 : vector<8x32xf32>
    %275 = arith.mulf %270, %274 : vector<8x32xf32>
    %276 = vector.extract_strided_slice %189 {offsets = [32, 0], sizes = [8, 128], strides = [1, 1]} : vector<64x128xf32> to vector<8x128xf32>
    %cst_66 = arith.constant dense<0.000000e+00> : vector<8x128xf32>
    %277 = tpu.matmul %275, %185, %cst_66 {dimension_numbers = #tpu.dot_dimension_numbers<[1], [0], [0], [1], [0, 0, 1, 1], [], []>} : vector<8x32xf32>, vector<32x128xf32>, vector<8x128xf32> -> vector<8x128xf32>
    %278 = arith.addf %276, %277 : vector<8x128xf32>
    %cst_67 = arith.constant 5.000000e-01 : f32
    %279 = vector.broadcast %cst_67 : f32 to vector<8x128xf32>
    %280 = arith.mulf %278, %279 : vector<8x128xf32>
    %281 = arith.select %5, %278, %280 : vector<8x128xi1>, vector<8x128xf32>
    %282 = math.tanh %281 : vector<8x128xf32>
    %cst_68 = arith.constant 1.000000e+00 : f32
    %283 = vector.broadcast %cst_68 : f32 to vector<8x128xf32>
    %284 = arith.addf %282, %283 : vector<8x128xf32>
    %cst_69 = arith.constant 5.000000e-01 : f32
    %285 = vector.broadcast %cst_69 : f32 to vector<8x128xf32>
    %286 = arith.mulf %284, %285 : vector<8x128xf32>
    %287 = arith.select %5, %282, %286 : vector<8x128xi1>, vector<8x128xf32>
    %288 = vector.extract_strided_slice %287 {offsets = [0, 0], sizes = [8, 32], strides = [1, 1]} : vector<8x128xf32> to vector<8x32xf32>
    %289 = vector.extract_strided_slice %287 {offsets = [0, 32], sizes = [8, 32], strides = [1, 1]} : vector<8x128xf32> to vector<8x32xf32>
    %290 = vector.extract_strided_slice %287 {offsets = [0, 64], sizes = [8, 32], strides = [1, 1]} : vector<8x128xf32> to vector<8x32xf32>
    %291 = vector.extract_strided_slice %287 {offsets = [0, 96], sizes = [8, 32], strides = [1, 1]} : vector<8x128xf32> to vector<8x32xf32>
    %292 = arith.mulf %289, %273 : vector<8x32xf32>
    %293 = arith.mulf %288, %290 : vector<8x32xf32>
    %294 = arith.addf %292, %293 : vector<8x32xf32>
    %295 = math.tanh %294 : vector<8x32xf32>
    %296 = arith.mulf %291, %295 : vector<8x32xf32>
    %297 = vector.extract_strided_slice %189 {offsets = [40, 0], sizes = [8, 128], strides = [1, 1]} : vector<64x128xf32> to vector<8x128xf32>
    %cst_70 = arith.constant dense<0.000000e+00> : vector<8x128xf32>
    %298 = tpu.matmul %296, %185, %cst_70 {dimension_numbers = #tpu.dot_dimension_numbers<[1], [0], [0], [1], [0, 0, 1, 1], [], []>} : vector<8x32xf32>, vector<32x128xf32>, vector<8x128xf32> -> vector<8x128xf32>
    %299 = arith.addf %297, %298 : vector<8x128xf32>
    %cst_71 = arith.constant 5.000000e-01 : f32
    %300 = vector.broadcast %cst_71 : f32 to vector<8x128xf32>
    %301 = arith.mulf %299, %300 : vector<8x128xf32>
    %302 = arith.select %5, %299, %301 : vector<8x128xi1>, vector<8x128xf32>
    %303 = math.tanh %302 : vector<8x128xf32>
    %cst_72 = arith.constant 1.000000e+00 : f32
    %304 = vector.broadcast %cst_72 : f32 to vector<8x128xf32>
    %305 = arith.addf %303, %304 : vector<8x128xf32>
    %cst_73 = arith.constant 5.000000e-01 : f32
    %306 = vector.broadcast %cst_73 : f32 to vector<8x128xf32>
    %307 = arith.mulf %305, %306 : vector<8x128xf32>
    %308 = arith.select %5, %303, %307 : vector<8x128xi1>, vector<8x128xf32>
    %309 = vector.extract_strided_slice %308 {offsets = [0, 0], sizes = [8, 32], strides = [1, 1]} : vector<8x128xf32> to vector<8x32xf32>
    %310 = vector.extract_strided_slice %308 {offsets = [0, 32], sizes = [8, 32], strides = [1, 1]} : vector<8x128xf32> to vector<8x32xf32>
    %311 = vector.extract_strided_slice %308 {offsets = [0, 64], sizes = [8, 32], strides = [1, 1]} : vector<8x128xf32> to vector<8x32xf32>
    %312 = vector.extract_strided_slice %308 {offsets = [0, 96], sizes = [8, 32], strides = [1, 1]} : vector<8x128xf32> to vector<8x32xf32>
    %313 = arith.mulf %310, %294 : vector<8x32xf32>
    %314 = arith.mulf %309, %311 : vector<8x32xf32>
    %315 = arith.addf %313, %314 : vector<8x32xf32>
    %316 = math.tanh %315 : vector<8x32xf32>
    %317 = arith.mulf %312, %316 : vector<8x32xf32>
    %318 = vector.extract_strided_slice %189 {offsets = [48, 0], sizes = [8, 128], strides = [1, 1]} : vector<64x128xf32> to vector<8x128xf32>
    %cst_74 = arith.constant dense<0.000000e+00> : vector<8x128xf32>
    %319 = tpu.matmul %317, %185, %cst_74 {dimension_numbers = #tpu.dot_dimension_numbers<[1], [0], [0], [1], [0, 0, 1, 1], [], []>} : vector<8x32xf32>, vector<32x128xf32>, vector<8x128xf32> -> vector<8x128xf32>
    %320 = arith.addf %318, %319 : vector<8x128xf32>
    %cst_75 = arith.constant 5.000000e-01 : f32
    %321 = vector.broadcast %cst_75 : f32 to vector<8x128xf32>
    %322 = arith.mulf %320, %321 : vector<8x128xf32>
    %323 = arith.select %5, %320, %322 : vector<8x128xi1>, vector<8x128xf32>
    %324 = math.tanh %323 : vector<8x128xf32>
    %cst_76 = arith.constant 1.000000e+00 : f32
    %325 = vector.broadcast %cst_76 : f32 to vector<8x128xf32>
    %326 = arith.addf %324, %325 : vector<8x128xf32>
    %cst_77 = arith.constant 5.000000e-01 : f32
    %327 = vector.broadcast %cst_77 : f32 to vector<8x128xf32>
    %328 = arith.mulf %326, %327 : vector<8x128xf32>
    %329 = arith.select %5, %324, %328 : vector<8x128xi1>, vector<8x128xf32>
    %330 = vector.extract_strided_slice %329 {offsets = [0, 0], sizes = [8, 32], strides = [1, 1]} : vector<8x128xf32> to vector<8x32xf32>
    %331 = vector.extract_strided_slice %329 {offsets = [0, 32], sizes = [8, 32], strides = [1, 1]} : vector<8x128xf32> to vector<8x32xf32>
    %332 = vector.extract_strided_slice %329 {offsets = [0, 64], sizes = [8, 32], strides = [1, 1]} : vector<8x128xf32> to vector<8x32xf32>
    %333 = vector.extract_strided_slice %329 {offsets = [0, 96], sizes = [8, 32], strides = [1, 1]} : vector<8x128xf32> to vector<8x32xf32>
    %334 = arith.mulf %331, %315 : vector<8x32xf32>
    %335 = arith.mulf %330, %332 : vector<8x32xf32>
    %336 = arith.addf %334, %335 : vector<8x32xf32>
    %337 = math.tanh %336 : vector<8x32xf32>
    %338 = arith.mulf %333, %337 : vector<8x32xf32>
    %339 = vector.extract_strided_slice %189 {offsets = [56, 0], sizes = [8, 128], strides = [1, 1]} : vector<64x128xf32> to vector<8x128xf32>
    %cst_78 = arith.constant dense<0.000000e+00> : vector<8x128xf32>
    %340 = tpu.matmul %338, %185, %cst_78 {dimension_numbers = #tpu.dot_dimension_numbers<[1], [0], [0], [1], [0, 0, 1, 1], [], []>} : vector<8x32xf32>, vector<32x128xf32>, vector<8x128xf32> -> vector<8x128xf32>
    %341 = arith.addf %339, %340 : vector<8x128xf32>
    %cst_79 = arith.constant 5.000000e-01 : f32
    %342 = vector.broadcast %cst_79 : f32 to vector<8x128xf32>
    %343 = arith.mulf %341, %342 : vector<8x128xf32>
    %344 = arith.select %5, %341, %343 : vector<8x128xi1>, vector<8x128xf32>
    %345 = math.tanh %344 : vector<8x128xf32>
    %cst_80 = arith.constant 1.000000e+00 : f32
    %346 = vector.broadcast %cst_80 : f32 to vector<8x128xf32>
    %347 = arith.addf %345, %346 : vector<8x128xf32>
    %cst_81 = arith.constant 5.000000e-01 : f32
    %348 = vector.broadcast %cst_81 : f32 to vector<8x128xf32>
    %349 = arith.mulf %347, %348 : vector<8x128xf32>
    %350 = arith.select %5, %345, %349 : vector<8x128xi1>, vector<8x128xf32>
    %351 = vector.extract_strided_slice %350 {offsets = [0, 0], sizes = [8, 32], strides = [1, 1]} : vector<8x128xf32> to vector<8x32xf32>
    %352 = vector.extract_strided_slice %350 {offsets = [0, 32], sizes = [8, 32], strides = [1, 1]} : vector<8x128xf32> to vector<8x32xf32>
    %353 = vector.extract_strided_slice %350 {offsets = [0, 64], sizes = [8, 32], strides = [1, 1]} : vector<8x128xf32> to vector<8x32xf32>
    %354 = vector.extract_strided_slice %350 {offsets = [0, 96], sizes = [8, 32], strides = [1, 1]} : vector<8x128xf32> to vector<8x32xf32>
    %355 = arith.mulf %352, %336 : vector<8x32xf32>
    %356 = arith.mulf %351, %353 : vector<8x32xf32>
    %357 = arith.addf %355, %356 : vector<8x32xf32>
    %358 = math.tanh %357 : vector<8x32xf32>
    %359 = arith.mulf %354, %358 : vector<8x32xf32>
    %c0_82 = arith.constant 0 : index
    %c0_83 = arith.constant 0 : index
    %360 = vector.load %arg7[%c0_82, %c0_83] : memref<32x4xf32, #tpu.memory_space<vmem>>, vector<32x4xf32>
    %cst_84 = arith.constant dense<0.000000e+00> : vector<8x4xf32>
    %361 = tpu.matmul %359, %360, %cst_84 {dimension_numbers = #tpu.dot_dimension_numbers<[1], [0], [0], [1], [0, 0, 1, 1], [], []>} : vector<8x32xf32>, vector<32x4xf32>, vector<8x4xf32> -> vector<8x4xf32>
    %c0_85 = arith.constant 0 : index
    %c0_86 = arith.constant 0 : index
    %362 = vector.load %arg8[%c0_85, %c0_86] : memref<1x4xf32, #tpu.memory_space<vmem>>, vector<1x4xf32>
    %363 = vector.broadcast %362 : vector<1x4xf32> to vector<8x4xf32>
    %364 = arith.addf %361, %363 : vector<8x4xf32>
    %365 = arith.negf %364 : vector<8x4xf32>
    %366 = math.exp %365 : vector<8x4xf32>
    %cst_87 = arith.constant 1.000000e+00 : f32
    %367 = vector.broadcast %cst_87 : f32 to vector<8x4xf32>
    %368 = arith.addf %367, %366 : vector<8x4xf32>
    %369 = arith.divf %367, %368 : vector<8x4xf32>
    %c0_88 = arith.constant 0 : index
    %c0_89 = arith.constant 0 : index
    %370 = vector.load %arg9[%c0_88, %c0_89] : memref<8x4xf32, #tpu.memory_space<vmem>>, vector<8x4xf32>
    tpu.vector_store %arg9[%c0_88, %c0_89], %369 {strides = array<i32>} : memref<8x4xf32, #tpu.memory_space<vmem>>, vector<8x4xf32>,
    return
  }
}

</mosaic_0001>

<bundles_post_ra>
// kernel: lstm_model_forward.1
= control target key start
LH: loop header
LB: loop body
LE: loop exit
PB: predicated region body
PF: predicated region fallthrough
CT: control target
= control target key end

     0   :  { %vm82_vm0 = vcmask 1043456   ;;  %vm57_vm1 = vcmask 31744   ;;  %v2537_v0 = vmov 0.0|0.0   ;;  %vm2538_vm2 = vmmov 0   ;;  %s2541_s23 = smov 32   ;;  %s3028_s2 = inlined_call_operand.vmem [shape: f32[32,128], index: 2, kind: input, shape index: {}]   ;;  %s3029_s1 = inlined_call_operand.vmem [shape: f32[4,128], index: 1, kind: input, shape index: {}]   ;;  %s3030_s0 = inlined_call_operand.vmem [shape: f32[64,4], index: 0, kind: input, shape index: {}]   ;;  %s3031_s3 = inlined_call_operand.vmem [shape: f32[1,128], index: 3, kind: input, shape index: {}]   ;;  %s3032_s4 = inlined_call_operand.vmem [shape: f32[32,128], index: 4, kind: input, shape index: {}]   ;;  %s3033_s5 = inlined_call_operand.vmem [shape: f32[32,128], index: 5, kind: input, shape index: {}]   ;;  %s3034_s6 = inlined_call_operand.vmem [shape: f32[1,128], index: 6, kind: input, shape index: {}]   ;;  %s3035_s7 = inlined_call_operand.vmem [shape: f32[32,4], index: 7, kind: input, shape index: {}]   ;;  %s3036_s8 = inlined_call_operand.vmem [shape: f32[1,4], index: 8, kind: input, shape index: {}]   ;;  %s3037_s9 = inlined_call_operand.vmem [shape: f32[8,4], index: 9, kind: output, shape index: {}]  }
   0x1   :  { %2354 = vmatprep.subr.bf16.mxu1 %v2537_v0  ;;  %v46_v1 = vld [vmem:[%s3028_s2] sm:$0xff]  ;;  %v47_v2 = vld [vmem:[%s3028_s2 + $0x8] sm:$0xff]  ;;  %v48_v7 = vld [vmem:[%s3028_s2 + $0x10] sm:$0xff]  ;;  %v2539_v8 = vmov 0.0   ;;  %v32_v11 = vlaneseq  ;;  %vm191_vm6 = vcmask 261120  }
   0x2   :  { %v45_v3 = vld [vmem:[%s3029_s1] sm:$0xf]  ;;  %v2602_v4 = vpack.c.bf16 %v47_v2, %v46_v1  ;;  %v38_v6 = vld [vmem:[%s3030_s0 + $0x8] sm:$0xff]  ;;  %2155 = vmatprep.mubr.msk.f32.mxu1 %vm2538_vm2, %v2539_v8  ;;  %v49_v9 = vld [vmem:[%s3028_s2 + $0x18] sm:$0xff] }
   0x3   :  { %2133 = vmatprep.subr.msk.mxu0 %vm82_vm0, %v45_v3  ;;  %v37_v5 = vld [vmem:[%s3030_s0] sm:$0xff]  ;;  %v2623_v10 = vpack.c.bf16 %v49_v9, %v48_v7  ;;  %v33_v15 = vand.u32 127, %v32_v11  ;;  %v39_v51 = vld [vmem:[%s3030_s0 + $0x10] sm:$0xff]  ;;  %v40_v52 = vld [vmem:[%s3030_s0 + $0x18] sm:$0xff] }
   0x4   :  { %2134 = vmatpush3.msk.msra.mxu0 %vm82_vm0, %v45_v3  ;;  %2135 = vmatprep.mubr.msk.f32.mxu0 %vm57_vm1, %v37_v5  ;;  %v2643_v13 = vld [vmem:[%s3031_s3] ss:$0 sm:$0xff]  ;;  %s2540_s3 = smov 64   ;;  %v42_v54 = vld [vmem:[%s3030_s0 + $0x28] sm:$0xff]  ;;  %v43_v55 = vld [vmem:[%s3030_s0 + $0x30] sm:$0xff] }
   0x5   :  { %2356 = vmatpush3.bf16.msra.mxu1 %v2602_v4  ;;  %2136 = vmatmul.mubr.msk.f32.vlgmr.msra.gmra.mrb[0].mxu0 %vm57_vm1, %v38_v6  ;;  %vm34_vm3 = vcmp.ge.s32.totalorder %v33_v15, 64  ;;  %vm35_vm4 = vcmp.lt.s32.totalorder %v33_v15, 96  ;;  %v41_v53 = vld [vmem:[%s3030_s0 + $0x20] sm:$0xff]  ;;  %v44_v56 = vld [vmem:[%s3030_s0 + $0x38] sm:$0xff]  ;;  %v1896_v20 = vld [vmem:[%s3035_s7 + $0x10] sm:$0xff] }
   0x6   :  { %2357 = vmatprep.subr.bf16.mxu1 %v2537_v0  ;;  %2366 = vmatprep.subr.bf16.mxu0 %v2537_v0  ;;  %vm2646_vm5 = vmand %vm34_vm3, %vm35_vm4 }
   0x7   :  { %2368 = vmatpush3.bf16.msra.mxu0 %v2602_v4  ;;  %2138 = vmatprep.mubr.msk.f32.mxu0 %vm57_vm1, %v39_v51 }
   0x8   :  { %2369 = vmatprep.subr.bf16.mxu0 %v2537_v0 }
   0x9   :  { %2359 = vmatpush3.bf16.msra.mxu1 %v2623_v10  ;;  %2139 = vmatmul.mubr.msk.f32.gmra.mrb[2].mxu0 %vm57_vm1, %v40_v52 }
   0xa   :  { %2360 = vmatprep.subr.bf16.mxu1 %v2537_v0  ;;  %2141 = vmatprep.mubr.msk.f32.mxu0 %vm57_vm1, %v41_v53 }
   0xb   :  { %2371 = vmatpush3.bf16.msra.mxu0 %v2623_v10 }
   0xc   :  { %2156 = vmatmul.mubr.f32.vlgmr.msra.gmra.mrb[0].mxu1 %v2539_v8  ;;  %2378 = vmatprep.subr.bf16.mxu0 %v2537_v0 }
   0xd   :  { %2362 = vmatpush3.bf16.msra.mxu1 %v2602_v4  ;;  %2166 = vmatprep.mubr.msk.f32.mxu1 %vm2538_vm2, %v2539_v8 }
   0xe   :  { %2363 = vmatprep.subr.bf16.mxu1 %v2537_v0  ;;  %2142 = vmatmul.mubr.msk.f32.gmra.mrb[4].mxu0 %vm57_vm1, %v42_v54 }
   0xf   :  { %2144 = vmatprep.mubr.msk.f32.mxu0 %vm57_vm1, %v43_v55 }
  0x11   :  { %2365 = vmatpush3.bf16.msra.mxu1 %v2623_v10 }
  0x12   :  { %2372 = vmatprep.subr.bf16.mxu1 %v2537_v0  ;;  %2145 = vmatmul.mubr.msk.f32.gmra.mrb[6].mxu0 %vm57_vm1, %v44_v56 }
  0x13   :  { %2177 = vmatprep.mubr.msk.f32.mxu0 %vm2538_vm2, %v2539_v8 }
  0xd8   :  { %v2137_v12 = vpop.f32.mrb[0].mxu0 }
  0xd9   :  { %v152_v14 = vpop.f32.mrb[1].mxu0  ;;  %v158_v36 = vadd.f32 %v2137_v12, %v2643_v13 }
  0xda   :  { %v153_v16 = vadd.f32 %v2643_v13, %v152_v14 }
  0xdc   :  { %v2140_v60 = vpop.f32.mrb[2].mxu0 }
  0xdd   :  { %v162_v61 = vpop.f32.mrb[3].mxu0 }
  0xde   :  { %v163_v5 = vadd.f32 %v2643_v13, %v162_v61 }
  0xdf   :  { %v261_v17 = vpop.f32.mrb[0].mxu1 }
  0xe0   :  { %v265_v18 = vadd.f32 %v261_v17, %v153_v16  ;;  %v2157_v19 = vpop.f32.mrb[1].mxu1 }
  0xe1   :  { %v2703_v62 = vpop.f32.mrb[4].mxu0 }
  0xe2   :  { %v266_v21 = vmul.f32 0.5, %v265_v18  ;;  %v2705_v63 = vpop.f32.mrb[5].mxu0 }
  0xe4   :  { %v267_v22 = vsel %vm2646_vm5, %v265_v18, %v266_v21 }
  0xe5   :  { %2469 = vtanh.f32 %v267_v22  ;;  %v2707_v1 = vpop.f32.mrb[6].mxu0 }
  0xe6   :  { %v2709_v2 = vpop.f32.mrb[7].mxu0 }
  0xef   :  { %v2470_v23 = vpop.eup %2469 }
  0xf0   :  { %v269_v24 = vadd.f32 1.0, %v2470_v23 }
  0xf2   :  { %v270_v25 = vmul.f32 0.5, %v269_v24 }
  0xf4   :  { %v271_v26 = vsel %vm2646_vm5, %v2470_v23, %v270_v25 }
  0xf5   :  { %274 = vrot.lane.b32.xlu0 %v271_v26, %s2540_s3  ;;  %v272_v29 = vmul.f32 0.0, %v271_v26 }
 0x167   :  { %v275_v27 = vpop.permute.xlu0 %274 }
 0x168   :  { %v277_v28 = vmul.f32 %v275_v27, %v271_v26 }
 0x16a   :  { %279 = vrot.lane.b32.xlu0 %v277_v28, %s2541_s23  ;;  %v168_v28 = vadd.f32 %v2140_v60, %v2643_v13 }
 0x1dc   :  { %v280_v30 = vpop.permute.xlu0 %279 }
 0x1dd   :  { %v282_v31 = vadd.f32 %v280_v30, %v272_v29 }
 0x1df   :  { %2471 = vtanh.f32 %v282_v31 }
 0x1e9   :  { %v2472_v32 = vpop.eup %2471 }
 0x1ea   :  { %285 = vrot.lane.b32.xlu1 %v2472_v32, %s2540_s3 }
 0x25c   :  { %v286_v33 = vpop.permute.xlu1 %285 }
 0x25d   :  { %v288_v34 = vmul.f32 %v286_v33, %v271_v26 }
 0x25f   :  { %290 = vrot.lane.b32.xlu1 %v288_v34, %s2541_s23 }
 0x2d1   :  { %v2658_v35 = vpop.permute.xlu1 %290 }
 0x2d2   :  { %2167 = vmatmul.mubr.msk.f32.vlgmr.msra.gmra.mrb[2].mxu1 %vm191_vm6, %v2658_v35 }
 0x2d3   :  { %2374 = vmatpush3.bf16.msra.mxu1 %v2602_v4  ;;  %2188 = vmatprep.mubr.msk.f32.mxu1 %vm2538_vm2, %v2539_v8 }
 0x2d4   :  { %2375 = vmatprep.subr.bf16.mxu1 %v2537_v0 }
 0x2d7   :  { %2377 = vmatpush3.bf16.msra.mxu1 %v2623_v10 }
 0x2d8   :  { %2384 = vmatprep.subr.bf16.mxu1 %v2537_v0 }
 0x3a5   :  { %v360_v37 = vpop.f32.mrb[2].mxu1 }
 0x3a6   :  { %v364_v38 = vadd.f32 %v360_v37, %v158_v36  ;;  %v2168_v39 = vpop.f32.mrb[3].mxu1 }
 0x3a8   :  { %v365_v40 = vmul.f32 0.5, %v364_v38 }
 0x3aa   :  { %v366_v41 = vsel %vm2646_vm5, %v364_v38, %v365_v40 }
 0x3ab   :  { %2473 = vtanh.f32 %v366_v41 }
 0x3b5   :  { %v2474_v42 = vpop.eup %2473 }
 0x3b6   :  { %v368_v43 = vadd.f32 1.0, %v2474_v42 }
 0x3b8   :  { %v369_v44 = vmul.f32 0.5, %v368_v43 }
 0x3ba   :  { %v370_v45 = vsel %vm2646_vm5, %v2474_v42, %v369_v44 }
 0x3bb   :  { %373 = vrot.lane.b32.xlu0 %v370_v45, %s2540_s3  ;;  %v371_v48 = vmul.f32 %v370_v45, %v282_v31 }
 0x42d   :  { %v374_v46 = vpop.permute.xlu0 %373 }
 0x42e   :  { %v376_v47 = vmul.f32 %v374_v46, %v370_v45 }
 0x430   :  { %378 = vrot.lane.b32.xlu1 %v376_v47, %s2541_s23 }
 0x4a2   :  { %v379_v49 = vpop.permute.xlu1 %378 }
 0x4a3   :  { %v381_v50 = vadd.f32 %v379_v49, %v371_v48  ;;  %v173_v48 = vadd.f32 %v2643_v13, %v2705_v63 }
 0x4a5   :  { %2475 = vtanh.f32 %v381_v50 }
 0x4af   :  { %v2476_v57 = vpop.eup %2475 }
 0x4b0   :  { %384 = vrot.lane.b32.xlu0 %v2476_v57, %s2540_s3 }
 0x522   :  { %v385_v58 = vpop.permute.xlu0 %384 }
 0x523   :  { %v387_v59 = vmul.f32 %v385_v58, %v370_v45 }
 0x525   :  { %389 = vrot.lane.b32.xlu1 %v387_v59, %s2541_s23 }
 0x597   :  { %v2711_v3 = vpop.permute.xlu1 %389 }
 0x598   :  { %2178 = vmatmul.mubr.msk.f32.vlgmr.msra.gmra.mrb[8].mxu0 %vm191_vm6, %v2711_v3 }
 0x599   :  { %2380 = vmatpush3.bf16.msra.mxu0 %v2602_v4  ;;  %2199 = vmatprep.mubr.msk.f32.mxu0 %vm2538_vm2, %v2539_v8 }
 0x59a   :  { %2381 = vmatprep.subr.bf16.mxu0 %v2537_v0 }
 0x59d   :  { %2383 = vmatpush3.bf16.msra.mxu0 %v2623_v10 }
 0x59e   :  { %2390 = vmatprep.subr.bf16.mxu0 %v2537_v0 }
 0x66b   :  { %v459_v6 = vpop.f32.mrb[8].mxu0 }
 0x66c   :  { %v463_v7 = vadd.f32 %v459_v6, %v163_v5  ;;  %v2179_v9 = vpop.f32.mrb[9].mxu0 }
 0x66e   :  { %v464_v11 = vmul.f32 0.5, %v463_v7 }
 0x670   :  { %v465_v12 = vsel %vm2646_vm5, %v463_v7, %v464_v11  ;;  %v178_v11 = vadd.f32 %v2703_v62, %v2643_v13 }
 0x671   :  { %2477 = vtanh.f32 %v465_v12 }
 0x67b   :  { %v2478_v14 = vpop.eup %2477 }
 0x67c   :  { %v467_v15 = vadd.f32 1.0, %v2478_v14 }
 0x67e   :  { %v468_v16 = vmul.f32 0.5, %v467_v15 }
 0x680   :  { %v469_v17 = vsel %vm2646_vm5, %v2478_v14, %v468_v16 }
 0x681   :  { %472 = vrot.lane.b32.xlu0 %v469_v17, %s2540_s3  ;;  %v470_v21 = vmul.f32 %v469_v17, %v381_v50 }
 0x6f3   :  { %v473_v18 = vpop.permute.xlu0 %472 }
 0x6f4   :  { %v475_v19 = vmul.f32 %v473_v18, %v469_v17 }
 0x6f6   :  { %477 = vrot.lane.b32.xlu1 %v475_v19, %s2541_s23 }
 0x768   :  { %v478_v22 = vpop.permute.xlu1 %477 }
 0x769   :  { %v480_v23 = vadd.f32 %v478_v22, %v470_v21 }
 0x76b   :  { %2479 = vtanh.f32 %v480_v23 }
 0x775   :  { %v2480_v24 = vpop.eup %2479 }
 0x776   :  { %483 = vrot.lane.b32.xlu0 %v2480_v24, %s2540_s3 }
 0x7e8   :  { %v484_v25 = vpop.permute.xlu0 %483 }
 0x7e9   :  { %v486_v26 = vmul.f32 %v484_v25, %v469_v17  ;;  %v982_v25 = vld [vmem:[%s3032_s4] sm:$0xff] }
 0x7eb   :  { %488 = vrot.lane.b32.xlu1 %v486_v26, %s2541_s23  ;;  %v983_v26 = vld [vmem:[%s3032_s4 + $0x8] sm:$0xff] }
 0x85d   :  { %v2730_v27 = vpop.permute.xlu1 %488 }
 0x85e   :  { %2189 = vmatmul.mubr.msk.f32.vlgmr.msra.gmra.mrb[4].mxu1 %vm191_vm6, %v2730_v27 }
 0x85f   :  { %2386 = vmatpush3.bf16.msra.mxu1 %v2602_v4  ;;  %2210 = vmatprep.mubr.msk.f32.mxu1 %vm2538_vm2, %v2539_v8 }
 0x860   :  { %2387 = vmatprep.subr.bf16.mxu1 %v2537_v0 }
 0x863   :  { %2389 = vmatpush3.bf16.msra.mxu1 %v2623_v10 }
 0x864   :  { %2396 = vmatprep.subr.bf16.mxu1 %v2537_v0 }
 0x931   :  { %v558_v29 = vpop.f32.mrb[4].mxu1 }
 0x932   :  { %v562_v30 = vadd.f32 %v558_v29, %v168_v28  ;;  %v2190_v31 = vpop.f32.mrb[5].mxu1  ;;  %v2402_v28 = vpack.c.bf16 %v983_v26, %v982_v25 }
 0x934   :  { %v563_v32 = vmul.f32 0.5, %v562_v30 }
 0x936   :  { %v564_v33 = vsel %vm2646_vm5, %v562_v30, %v563_v32  ;;  %v984_v32 = vld [vmem:[%s3032_s4 + $0x10] sm:$0xff] }
 0x937   :  { %2481 = vtanh.f32 %v564_v33  ;;  %v985_v33 = vld [vmem:[%s3032_s4 + $0x18] sm:$0xff] }
 0x941   :  { %v2482_v34 = vpop.eup %2481 }
 0x942   :  { %v566_v36 = vadd.f32 1.0, %v2482_v34 }
 0x944   :  { %v567_v37 = vmul.f32 0.5, %v566_v36 }
 0x946   :  { %v568_v38 = vsel %vm2646_vm5, %v2482_v34, %v567_v37  ;;  %v2406_v34 = vpack.c.bf16 %v985_v33, %v984_v32 }
 0x947   :  { %571 = vrot.lane.b32.xlu0 %v568_v38, %s2540_s3  ;;  %v569_v41 = vmul.f32 %v568_v38, %v480_v23 }
 0x9b9   :  { %v572_v39 = vpop.permute.xlu0 %571 }
 0x9ba   :  { %v574_v40 = vmul.f32 %v572_v39, %v568_v38 }
 0x9bc   :  { %576 = vrot.lane.b32.xlu1 %v574_v40, %s2541_s23 }
 0xa2e   :  { %v577_v42 = vpop.permute.xlu1 %576 }
 0xa2f   :  { %v579_v43 = vadd.f32 %v577_v42, %v569_v41 }
 0xa31   :  { %2483 = vtanh.f32 %v579_v43 }
 0xa3b   :  { %v2484_v44 = vpop.eup %2483 }
 0xa3c   :  { %582 = vrot.lane.b32.xlu0 %v2484_v44, %s2540_s3 }
 0xaae   :  { %v583_v45 = vpop.permute.xlu0 %582 }
 0xaaf   :  { %v585_v46 = vmul.f32 %v583_v45, %v568_v38 }
 0xab1   :  { %587 = vrot.lane.b32.xlu1 %v585_v46, %s2541_s23 }
 0xb23   :  { %v2749_v47 = vpop.permute.xlu1 %587 }
 0xb24   :  { %2200 = vmatmul.mubr.msk.f32.vlgmr.msra.gmra.mrb[10].mxu0 %vm191_vm6, %v2749_v47 }
 0xb25   :  { %2392 = vmatpush3.bf16.msra.mxu0 %v2602_v4  ;;  %2221 = vmatprep.mubr.msk.f32.mxu0 %vm2538_vm2, %v2539_v8 }
 0xb26   :  { %2393 = vmatprep.subr.bf16.mxu0 %v2537_v0 }
 0xb29   :  { %2395 = vmatpush3.bf16.msra.mxu0 %v2623_v10 }
 0xb2a   :  { %2403 = vmatprep.subr.bf16.mxu0 %v2402_v28 }
 0xbf7   :  { %v657_v49 = vpop.f32.mrb[10].mxu0 }
 0xbf8   :  { %v661_v50 = vadd.f32 %v657_v49, %v173_v48  ;;  %v2201_v51 = vpop.f32.mrb[11].mxu0 }
 0xbfa   :  { %v662_v52 = vmul.f32 0.5, %v661_v50 }
 0xbfc   :  { %v663_v53 = vsel %vm2646_vm5, %v661_v50, %v662_v52 }
 0xbfd   :  { %2485 = vtanh.f32 %v663_v53 }
 0xc07   :  { %v2486_v54 = vpop.eup %2485 }
 0xc08   :  { %v665_v55 = vadd.f32 1.0, %v2486_v54 }
 0xc0a   :  { %v666_v56 = vmul.f32 0.5, %v665_v55  ;;  %v986_v55 = vld [vmem:[%s3033_s5] sm:$0xff] }
 0xc0c   :  { %v667_v57 = vsel %vm2646_vm5, %v2486_v54, %v666_v56  ;;  %v987_v56 = vld [vmem:[%s3033_s5 + $0x8] sm:$0xff] }
 0xc0d   :  { %670 = vrot.lane.b32.xlu0 %v667_v57, %s2540_s3  ;;  %v668_v60 = vmul.f32 %v667_v57, %v579_v43 }
 0xc7f   :  { %v671_v58 = vpop.permute.xlu0 %670 }
 0xc80   :  { %v673_v59 = vmul.f32 %v671_v58, %v667_v57  ;;  %v988_v58 = vld [vmem:[%s3033_s5 + $0x10] sm:$0xff] }
 0xc82   :  { %675 = vrot.lane.b32.xlu1 %v673_v59, %s2541_s23  ;;  %v989_v59 = vld [vmem:[%s3033_s5 + $0x18] sm:$0xff] }
 0xcf4   :  { %v676_v61 = vpop.permute.xlu1 %675 }
 0xcf5   :  { %v678_v63 = vadd.f32 %v676_v61, %v668_v60  ;;  %v2847_v60 = vpack.c.bf16 %v989_v59, %v988_v58 }
 0xcf7   :  { %2487 = vtanh.f32 %v678_v63 }
 0xd01   :  { %v2488_v5 = vpop.eup %2487 }
 0xd02   :  { %681 = vrot.lane.b32.xlu0 %v2488_v5, %s2540_s3 }
 0xd74   :  { %v682_v6 = vpop.permute.xlu0 %681 }
 0xd75   :  { %v684_v7 = vmul.f32 %v682_v6, %v667_v57  ;;  %v2837_v57 = vpack.c.bf16 %v987_v56, %v986_v55  ;;  %v188_v6 = vadd.f32 %v2707_v1, %v2643_v13 }
 0xd77   :  { %686 = vrot.lane.b32.xlu1 %v684_v7, %s2541_s23 }
 0xde9   :  { %v687_v9 = vpop.permute.xlu1 %686 }
 0xdea   :  { %2211 = vmatmul.mubr.msk.f32.vlgmr.msra.gmra.mrb[6].mxu1 %vm191_vm6, %v687_v9 }
 0xdeb   :  { %2398 = vmatpush3.bf16.msra.mxu1 %v2602_v4  ;;  %2232 = vmatprep.mubr.msk.f32.mxu1 %vm2538_vm2, %v2539_v8 }
 0xdec   :  { %2399 = vmatprep.subr.bf16.mxu1 %v2537_v0 }
 0xdef   :  { %2401 = vmatpush3.bf16.msra.mxu1 %v2623_v10 }
 0xdf0   :  { %2410 = vmatprep.subr.bf16.mxu1 %v2537_v0 }
 0xebd   :  { %v756_v12 = vpop.f32.mrb[6].mxu1 }
 0xebe   :  { %v760_v14 = vadd.f32 %v756_v12, %v178_v11  ;;  %v2212_v15 = vpop.f32.mrb[7].mxu1  ;;  %v2872_v12 = vld [vmem:[%s3034_s6] ss:$0 sm:$0xff] }
 0xec0   :  { %v761_v16 = vmul.f32 0.5, %v760_v14 }
 0xec2   :  { %v762_v17 = vsel %vm2646_vm5, %v760_v14, %v761_v16 }
 0xec3   :  { %2489 = vtanh.f32 %v762_v17 }
 0xecd   :  { %v2490_v4 = vpop.eup %2489 }
 0xece   :  { %v764_v18 = vadd.f32 1.0, %v2490_v4 }
 0xed0   :  { %v765_v19 = vmul.f32 0.5, %v764_v18 }
 0xed2   :  { %v766_v21 = vsel %vm2646_vm5, %v2490_v4, %v765_v19 }
 0xed3   :  { %769 = vrot.lane.b32.xlu0 %v766_v21, %s2540_s3  ;;  %v767_v62 = vmul.f32 %v766_v21, %v678_v63 }
 0xf45   :  { %v770_v10 = vpop.permute.xlu0 %769 }
 0xf46   :  { %v772_v22 = vmul.f32 %v770_v10, %v766_v21 }
 0xf48   :  { %774 = vrot.lane.b32.xlu1 %v772_v22, %s2541_s23 }
 0xfba   :  { %v775_v23 = vpop.permute.xlu1 %774 }
 0xfbb   :  { %v777_v24 = vadd.f32 %v775_v23, %v767_v62 }
 0xfbd   :  { %2491 = vtanh.f32 %v777_v24 }
 0xfc7   :  { %v2492_v29 = vpop.eup %2491 }
 0xfc8   :  { %780 = vrot.lane.b32.xlu0 %v2492_v29, %s2540_s3 }
0x103a   :  { %v781_v30 = vpop.permute.xlu0 %780 }
0x103b   :  { %v783_v31 = vmul.f32 %v781_v30, %v766_v21 }
0x103d   :  { %785 = vrot.lane.b32.xlu1 %v783_v31, %s2541_s23 }
0x10af   :  { %v786_v36 = vpop.permute.xlu1 %785 }
0x10b0   :  { %2222 = vmatmul.mubr.msk.f32.vlgmr.msra.gmra.mrb[12].mxu0 %vm191_vm6, %v786_v36 }
0x10b1   :  { %2405 = vmatpush3.bf16.msra.mxu0 %v2402_v28  ;;  %2243 = vmatprep.mubr.msk.f32.mxu0 %vm191_vm6, %v2658_v35  ;;  %v183_v35 = vadd.f32 %v2643_v13, %v2709_v2 }
0x10b2   :  { %2407 = vmatprep.subr.bf16.mxu0 %v2406_v34 }
0x10b5   :  { %2409 = vmatpush3.bf16.msra.mxu0 %v2406_v34 }
0x10b6   :  { %2422 = vmatprep.subr.bf16.mxu0 %v2537_v0 }
0x10b8   :  { %2244 = vmatmul.mubr.msk.f32.vlgmr.msra.gmra.mrb[14].mxu0 %vm191_vm6, %v2711_v3 }
0x10b9   :  { %2246 = vmatprep.mubr.msk.f32.mxu0 %vm191_vm6, %v2730_v27  ;;  %2424 = vmatpush3.bf16.msra.mxu0 %v2837_v57 }
0x10ba   :  { %2425 = vmatprep.subr.bf16.mxu0 %v2537_v0 }
0x10bc   :  { %2247 = vmatmul.mubr.msk.f32.gmra.mrb[16].mxu0 %vm191_vm6, %v2749_v47 }
0x10bd   :  { %2249 = vmatprep.mubr.msk.f32.mxu0 %vm191_vm6, %v687_v9  ;;  %2427 = vmatpush3.bf16.msra.mxu0 %v2847_v60 }
0x10be   :  { %2434 = vmatprep.subr.bf16.mxu0 %v2537_v0 }
0x10c0   :  { %2250 = vmatmul.mubr.msk.f32.gmra.mrb[18].mxu0 %vm191_vm6, %v786_v36 }
0x1183   :  { %v855_v37 = vpop.f32.mrb[12].mxu0 }
0x1184   :  { %v859_v38 = vadd.f32 %v855_v37, %v183_v35  ;;  %v2223_v39 = vpop.f32.mrb[13].mxu0 }
0x1186   :  { %v860_v40 = vmul.f32 0.5, %v859_v38 }
0x1188   :  { %v861_v3 = vsel %vm2646_vm5, %v859_v38, %v860_v40 }
0x1189   :  { %2493 = vtanh.f32 %v861_v3 }
0x118b   :  { %v2813_v41 = vpop.f32.mrb[14].mxu0 }
0x118c   :  { %v1068_v27 = vpop.f32.mrb[15].mxu0 }
0x118d   :  { %v1069_v14 = vadd.f32 %v2872_v12, %v1068_v27 }
0x118f   :  { %v2815_v42 = vpop.f32.mrb[16].mxu0 }
0x1190   :  { %v2817_v43 = vpop.f32.mrb[17].mxu0 }
0x1193   :  { %v2494_v44 = vpop.eup %2493  ;;  %v2819_v45 = vpop.f32.mrb[18].mxu0 }
0x1194   :  { %v2821_v46 = vpop.f32.mrb[19].mxu0  ;;  %v863_v2 = vadd.f32 1.0, %v2494_v44 }
0x1196   :  { %v864_v47 = vmul.f32 0.5, %v863_v2  ;;  %v1074_v2 = vadd.f32 %v2813_v41, %v2872_v12 }
0x1198   :  { %v865_v48 = vsel %vm2646_vm5, %v2494_v44, %v864_v47 }
0x1199   :  { %868 = vrot.lane.b32.xlu0 %v865_v48, %s2540_s3  ;;  %v866_v51 = vmul.f32 %v865_v48, %v777_v24 }
0x120b   :  { %v869_v49 = vpop.permute.xlu0 %868 }
0x120c   :  { %v871_v50 = vmul.f32 %v869_v49, %v865_v48 }
0x120e   :  { %873 = vrot.lane.b32.xlu1 %v871_v50, %s2541_s23 }
0x1280   :  { %v874_v52 = vpop.permute.xlu1 %873 }
0x1281   :  { %v2827_v53 = vadd.f32 %v874_v52, %v866_v51 }
0x1283   :  { %2495 = vtanh.f32 %v2827_v53 }
0x128d   :  { %v2496_v54 = vpop.eup %2495 }
0x128e   :  { %879 = vrot.lane.b32.xlu0 %v2496_v54, %s2540_s3 }
0x1300   :  { %v880_v61 = vpop.permute.xlu0 %879 }
0x1301   :  { %v882_v63 = vmul.f32 %v880_v61, %v865_v48 }
0x1303   :  { %884 = vrot.lane.b32.xlu1 %v882_v63, %s2541_s23 }
0x1375   :  { %v885_v5 = vpop.permute.xlu1 %884 }
0x1376   :  { %2233 = vmatmul.mubr.msk.f32.vlgmr.msra.gmra.mrb[8].mxu1 %vm191_vm6, %v885_v5  ;;  %2252 = vmatprep.mubr.msk.f32.mxu0 %vm191_vm6, %v885_v5 }
0x1377   :  { %2412 = vmatpush3.bf16.msra.mxu1 %v2837_v57  ;;  %2263 = vmatprep.mubr.msk.f32.mxu1 %vm2538_vm2, %v2539_v8 }
0x1378   :  { %2413 = vmatprep.subr.bf16.mxu1 %v2537_v0 }
0x137b   :  { %2415 = vmatpush3.bf16.msra.mxu1 %v2847_v60 }
0x137c   :  { %2416 = vmatprep.subr.bf16.mxu1 %v2537_v0 }
0x137e   :  { %2264 = vmatmul.mubr.f32.vlgmr.msra.gmra.mrb[10].mxu1 %v2539_v8 }
0x137f   :  { %2418 = vmatpush3.bf16.msra.mxu1 %v2837_v57  ;;  %2274 = vmatprep.mubr.msk.f32.mxu1 %vm2538_vm2, %v2539_v8 }
0x1380   :  { %2419 = vmatprep.subr.bf16.mxu1 %v2537_v0 }
0x1383   :  { %2421 = vmatpush3.bf16.msra.mxu1 %v2847_v60 }
0x1384   :  { %2428 = vmatprep.subr.bf16.mxu1 %v2537_v0 }
0x1449   :  { %v954_v7 = vpop.f32.mrb[8].mxu1 }
0x144a   :  { %v958_v9 = vadd.f32 %v954_v7, %v188_v6  ;;  %v2234_v11 = vpop.f32.mrb[9].mxu1 }
0x144c   :  { %v959_v62 = vmul.f32 0.5, %v958_v9 }
0x144e   :  { %v960_v23 = vsel %vm2646_vm5, %v958_v9, %v959_v62 }
0x1451   :  { %v1173_v15 = vpop.f32.mrb[10].mxu1 }
0x1452   :  { %v1177_v16 = vadd.f32 %v1173_v15, %v1069_v14  ;;  %v2265_v17 = vpop.f32.mrb[11].mxu1  ;;  %v1079_v15 = vadd.f32 %v2872_v12, %v2817_v43 }
0x1454   :  { %v1178_v4 = vmul.f32 0.5, %v1177_v16 }
0x1456   :  { %v1179_v18 = vsel %vm2646_vm5, %v1177_v16, %v1178_v4 }
0x1457   :  { %2497 = vtanh.f32 %v1179_v18 }
0x1458   :  { %2499 = vtanh.f32 %v960_v23 }
0x1461   :  { %v2498_v19 = vpop.eup %2497 }
0x1462   :  { %v1181_v13 = vadd.f32 1.0, %v2498_v19  ;;  %v2500_v28 = vpop.eup %2499 }
0x1463   :  { %v962_v29 = vadd.f32 1.0, %v2500_v28 }
0x1464   :  { %v1182_v1 = vmul.f32 0.5, %v1181_v13 }
0x1465   :  { %v963_v31 = vmul.f32 0.5, %v962_v29 }
0x1466   :  { %v1183_v21 = vsel %vm2646_vm5, %v2498_v19, %v1182_v1 }
0x1467   :  { %1186 = vrot.lane.b32.xlu0 %v1183_v21, %s2540_s3  ;;  %v1184_v24 = vmul.f32 0.0, %v1183_v21  ;;  %v964_v32 = vsel %vm2646_vm5, %v2500_v28, %v963_v31 }
0x1468   :  { %v965_v38 = vmul.f32 %v964_v32, %v2827_v53 }
0x14d9   :  { %v1187_v10 = vpop.permute.xlu0 %1186 }
0x14da   :  { %v1189_v22 = vmul.f32 %v1187_v10, %v1183_v21 }
0x14dc   :  { %1191 = vrot.lane.b32.xlu1 %v1189_v22, %s2541_s23 }
0x154e   :  { %v1192_v25 = vpop.permute.xlu1 %1191 }
0x154f   :  { %v1194_v26 = vadd.f32 %v1192_v25, %v1184_v24 }
0x1551   :  { %2501 = vtanh.f32 %v1194_v26 }
0x155b   :  { %v2502_v30 = vpop.eup %2501 }
0x155c   :  { %1197 = vrot.lane.b32.xlu0 %v2502_v30, %s2540_s3  ;;  %v1084_v30 = vadd.f32 %v2815_v42, %v2872_v12 }
0x1560   :  { %967 = vrot.lane.b32.xlu0 %v964_v32, %s2540_s3 }
0x15ce   :  { %v1198_v33 = vpop.permute.xlu0 %1197 }
0x15cf   :  { %v1200_v34 = vmul.f32 %v1198_v33, %v1183_v21 }
0x15d1   :  { %1202 = vrot.lane.b32.xlu1 %v1200_v34, %s2541_s23 }
0x15d2   :  { %v968_v36 = vpop.permute.xlu0 %967 }
0x15d3   :  { %v970_v35 = vmul.f32 %v968_v36, %v964_v32 }
0x15d5   :  { %972 = vrot.lane.b32.xlu0 %v970_v35, %s2541_s23 }
0x1643   :  { %v1203_v37 = vpop.permute.xlu1 %1202 }
0x1644   :  { %2275 = vmatmul.mubr.msk.f32.vlgmr.msra.gmra.mrb[12].mxu1 %vm191_vm6, %v1203_v37 }
0x1645   :  { %2430 = vmatpush3.bf16.msra.mxu1 %v2837_v57  ;;  %2296 = vmatprep.mubr.msk.f32.mxu1 %vm2538_vm2, %v2539_v8 }
0x1646   :  { %2431 = vmatprep.subr.bf16.mxu1 %v2537_v0 }
0x1647   :  { %v973_v39 = vpop.permute.xlu0 %972 }
0x1648   :  { %v975_v40 = vadd.f32 %v973_v39, %v965_v38 }
0x1649   :  { %2433 = vmatpush3.bf16.msra.mxu1 %v2847_v60 }
0x164a   :  { %2503 = vtanh.f32 %v975_v40  ;;  %2440 = vmatprep.subr.bf16.mxu1 %v2537_v0 }
0x1654   :  { %v2504_v3 = vpop.eup %2503 }
0x1655   :  { %978 = vrot.lane.b32.xlu0 %v2504_v3, %s2540_s3 }
0x16c7   :  { %v979_v27 = vpop.permute.xlu0 %978 }
0x16c8   :  { %v981_v44 = vmul.f32 %v979_v27, %v964_v32 }
0x16ca   :  { %998 = vrot.lane.b32.xlu0 %v981_v44, %s2541_s23 }
0x1717   :  { %v1272_v47 = vpop.f32.mrb[12].mxu1 }
0x1718   :  { %v1276_v48 = vadd.f32 %v1272_v47, %v1074_v2  ;;  %v2276_v49 = vpop.f32.mrb[13].mxu1 }
0x171a   :  { %v1277_v50 = vmul.f32 0.5, %v1276_v48 }
0x171c   :  { %v1278_v51 = vsel %vm2646_vm5, %v1276_v48, %v1277_v50  ;;  %v1089_v50 = vadd.f32 %v2872_v12, %v2821_v46 }
0x171d   :  { %2505 = vtanh.f32 %v1278_v51 }
0x1727   :  { %v2506_v52 = vpop.eup %2505 }
0x1728   :  { %v1280_v53 = vadd.f32 1.0, %v2506_v52 }
0x172a   :  { %v1281_v54 = vmul.f32 0.5, %v1280_v53 }
0x172c   :  { %v1282_v55 = vsel %vm2646_vm5, %v2506_v52, %v1281_v54 }
0x172d   :  { %1285 = vrot.lane.b32.xlu1 %v1282_v55, %s2540_s3  ;;  %v1283_v63 = vmul.f32 %v1282_v55, %v1194_v26 }
0x173c   :  { %v999_v56 = vpop.permute.xlu0 %998 }
0x173d   :  { %2253 = vmatmul.mubr.msk.f32.gmra.mrb[20].mxu0 %vm191_vm6, %v999_v56 }
0x173e   :  { %2285 = vmatprep.mubr.msk.f32.mxu0 %vm2538_vm2, %v2539_v8 }
0x179f   :  { %v1286_v41 = vpop.permute.xlu1 %1285 }
0x17a0   :  { %v1288_v58 = vmul.f32 %v1286_v41, %v1282_v55 }
0x17a2   :  { %1290 = vrot.lane.b32.xlu1 %v1288_v58, %s2541_s23 }
0x1810   :  { %v2910_v59 = vpop.f32.mrb[20].mxu0 }
0x1811   :  { %v2912_v61 = vpop.f32.mrb[21].mxu0 }
0x1814   :  { %v1291_v5 = vpop.permute.xlu1 %1290 }
0x1815   :  { %v1293_v6 = vadd.f32 %v1291_v5, %v1283_v63 }
0x1817   :  { %2507 = vtanh.f32 %v1293_v6 }
0x1821   :  { %v2508_v7 = vpop.eup %2507 }
0x1822   :  { %1296 = vrot.lane.b32.xlu1 %v2508_v7, %s2540_s3 }
0x1894   :  { %v1297_v9 = vpop.permute.xlu1 %1296 }
0x1895   :  { %v1299_v11 = vmul.f32 %v1297_v9, %v1282_v55 }
0x1897   :  { %1301 = vrot.lane.b32.xlu1 %v1299_v11, %s2541_s23 }
0x1909   :  { %v1302_v14 = vpop.permute.xlu1 %1301 }
0x190a   :  { %2286 = vmatmul.mubr.msk.f32.vlgmr.msra.gmra.mrb[22].mxu0 %vm191_vm6, %v1302_v14 }
0x190b   :  { %2436 = vmatpush3.bf16.msra.mxu0 %v2837_v57  ;;  %2307 = vmatprep.mubr.msk.f32.mxu0 %vm2538_vm2, %v2539_v8 }
0x190c   :  { %2437 = vmatprep.subr.bf16.mxu0 %v2537_v0 }
0x190f   :  { %2439 = vmatpush3.bf16.msra.mxu0 %v2847_v60 }
0x1910   :  { %2446 = vmatprep.subr.bf16.mxu0 %v2537_v0 }
0x19dd   :  { %v1371_v16 = vpop.f32.mrb[22].mxu0 }
0x19de   :  { %v1375_v17 = vadd.f32 %v1371_v16, %v1079_v15  ;;  %v2287_v4 = vpop.f32.mrb[23].mxu0 }
0x19e0   :  { %v1376_v18 = vmul.f32 0.5, %v1375_v17 }
0x19e2   :  { %v1377_v19 = vsel %vm2646_vm5, %v1375_v17, %v1376_v18  ;;  %v1094_v17 = vadd.f32 %v2819_v45, %v2872_v12 }
0x19e3   :  { %2509 = vtanh.f32 %v1377_v19 }
0x19ed   :  { %v2510_v13 = vpop.eup %2509 }
0x19ee   :  { %v1379_v1 = vadd.f32 1.0, %v2510_v13 }
0x19f0   :  { %v1380_v21 = vmul.f32 0.5, %v1379_v1 }
0x19f2   :  { %v1381_v10 = vsel %vm2646_vm5, %v2510_v13, %v1380_v21 }
0x19f3   :  { %1384 = vrot.lane.b32.xlu0 %v1381_v10, %s2540_s3  ;;  %v1382_v43 = vmul.f32 %v1381_v10, %v1293_v6 }
0x1a65   :  { %v1385_v22 = vpop.permute.xlu0 %1384 }
0x1a66   :  { %v1387_v62 = vmul.f32 %v1385_v22, %v1381_v10 }
0x1a68   :  { %1389 = vrot.lane.b32.xlu1 %v1387_v62, %s2541_s23 }
0x1ada   :  { %v1390_v23 = vpop.permute.xlu1 %1389 }
0x1adb   :  { %v1392_v24 = vadd.f32 %v1390_v23, %v1382_v43 }
0x1add   :  { %2511 = vtanh.f32 %v1392_v24 }
0x1ae7   :  { %v2512_v25 = vpop.eup %2511 }
0x1ae8   :  { %1395 = vrot.lane.b32.xlu0 %v2512_v25, %s2540_s3 }
0x1b5a   :  { %v1396_v26 = vpop.permute.xlu0 %1395 }
0x1b5b   :  { %v1398_v28 = vmul.f32 %v1396_v26, %v1381_v10 }
0x1b5d   :  { %1400 = vrot.lane.b32.xlu1 %v1398_v28, %s2541_s23 }
0x1bcf   :  { %v1401_v29 = vpop.permute.xlu1 %1400 }
0x1bd0   :  { %2297 = vmatmul.mubr.msk.f32.vlgmr.msra.gmra.mrb[14].mxu1 %vm191_vm6, %v1401_v29  ;;  %v1099_v29 = vadd.f32 %v2872_v12, %v2912_v61 }
0x1bd1   :  { %2442 = vmatpush3.bf16.msra.mxu1 %v2837_v57  ;;  %2318 = vmatprep.mubr.msk.f32.mxu1 %vm2538_vm2, %v2539_v8 }
0x1bd2   :  { %2443 = vmatprep.subr.bf16.mxu1 %v2537_v0 }
0x1bd5   :  { %2445 = vmatpush3.bf16.msra.mxu1 %v2847_v60 }
0x1bd6   :  { %2452 = vmatprep.subr.bf16.mxu1 %v2537_v0 }
0x1ca3   :  { %v1470_v31 = vpop.f32.mrb[14].mxu1 }
0x1ca4   :  { %v1474_v32 = vadd.f32 %v1470_v31, %v1084_v30  ;;  %v2298_v33 = vpop.f32.mrb[15].mxu1 }
0x1ca6   :  { %v1475_v34 = vmul.f32 0.5, %v1474_v32 }
0x1ca8   :  { %v1476_v36 = vsel %vm2646_vm5, %v1474_v32, %v1475_v34 }
0x1ca9   :  { %2513 = vtanh.f32 %v1476_v36 }
0x1cb3   :  { %v2514_v35 = vpop.eup %2513 }
0x1cb4   :  { %v1478_v37 = vadd.f32 1.0, %v2514_v35 }
0x1cb6   :  { %v1479_v38 = vmul.f32 0.5, %v1478_v37 }
0x1cb8   :  { %v1480_v39 = vsel %vm2646_vm5, %v2514_v35, %v1479_v38 }
0x1cb9   :  { %1483 = vrot.lane.b32.xlu0 %v1480_v39, %s2540_s3  ;;  %v1481_v42 = vmul.f32 %v1480_v39, %v1392_v24 }
0x1d2b   :  { %v1484_v40 = vpop.permute.xlu0 %1483 }
0x1d2c   :  { %v1486_v3 = vmul.f32 %v1484_v40, %v1480_v39 }
0x1d2e   :  { %1488 = vrot.lane.b32.xlu1 %v1486_v3, %s2541_s23 }
0x1da0   :  { %v1489_v27 = vpop.permute.xlu1 %1488 }
0x1da1   :  { %v1491_v44 = vadd.f32 %v1489_v27, %v1481_v42 }
0x1da3   :  { %2515 = vtanh.f32 %v1491_v44 }
0x1dad   :  { %v2516_v2 = vpop.eup %2515 }
0x1dae   :  { %1494 = vrot.lane.b32.xlu0 %v2516_v2, %s2540_s3 }
0x1e20   :  { %v1495_v47 = vpop.permute.xlu0 %1494 }
0x1e21   :  { %v1497_v48 = vmul.f32 %v1495_v47, %v1480_v39  ;;  %v1104_v47 = vadd.f32 %v2910_v59, %v2872_v12 }
0x1e23   :  { %1499 = vrot.lane.b32.xlu1 %v1497_v48, %s2541_s23 }
0x1e95   :  { %v1500_v49 = vpop.permute.xlu1 %1499 }
0x1e96   :  { %2308 = vmatmul.mubr.msk.f32.vlgmr.msra.gmra.mrb[24].mxu0 %vm191_vm6, %v1500_v49 }
0x1e97   :  { %2448 = vmatpush3.bf16.msra.mxu0 %v2837_v57  ;;  %2329 = vmatprep.mubr.msk.f32.mxu0 %vm2538_vm2, %v2539_v8 }
0x1e98   :  { %2449 = vmatprep.subr.bf16.mxu0 %v2537_v0 }
0x1e9b   :  { %2451 = vmatpush3.bf16.msra.mxu0 %v2847_v60 }
0x1e9c   :  { %2458 = vmatprep.subr.bf16.mxu0 %v2537_v0 }
0x1f69   :  { %v1569_v51 = vpop.f32.mrb[24].mxu0 }
0x1f6a   :  { %v1573_v52 = vadd.f32 %v1569_v51, %v1089_v50  ;;  %v2309_v53 = vpop.f32.mrb[25].mxu0 }
0x1f6c   :  { %v1574_v54 = vmul.f32 0.5, %v1573_v52 }
0x1f6e   :  { %v1575_v55 = vsel %vm2646_vm5, %v1573_v52, %v1574_v54 }
0x1f6f   :  { %2517 = vtanh.f32 %v1575_v55 }
0x1f79   :  { %v2518_v56 = vpop.eup %2517 }
0x1f7a   :  { %v1577_v41 = vadd.f32 1.0, %v2518_v56 }
0x1f7c   :  { %v1578_v58 = vmul.f32 0.5, %v1577_v41 }
0x1f7e   :  { %v1579_v63 = vsel %vm2646_vm5, %v2518_v56, %v1578_v58 }
0x1f7f   :  { %1582 = vrot.lane.b32.xlu0 %v1579_v63, %s2540_s3  ;;  %v1580_v46 = vmul.f32 %v1579_v63, %v1491_v44 }
0x1ff1   :  { %v1583_v5 = vpop.permute.xlu0 %1582 }
0x1ff2   :  { %v1585_v6 = vmul.f32 %v1583_v5, %v1579_v63  ;;  %v1894_v5 = vld [vmem:[%s3035_s7] sm:$0xff] }
0x1ff4   :  { %1587 = vrot.lane.b32.xlu1 %v1585_v6, %s2541_s23  ;;  %v1895_v6 = vld [vmem:[%s3035_s7 + $0x8] sm:$0xff] }
0x2066   :  { %v1588_v7 = vpop.permute.xlu1 %1587 }
0x2067   :  { %v1590_v9 = vadd.f32 %v1588_v7, %v1580_v46  ;;  %v2459_v46 = vpack.c.bf16 %v1895_v6, %v1894_v5  ;;  %v1897_v7 = vld [vmem:[%s3035_s7 + $0x18] sm:$0xff] }
0x2069   :  { %2519 = vtanh.f32 %v1590_v9 }
0x2073   :  { %v2520_v11 = vpop.eup %2519 }
0x2074   :  { %1593 = vrot.lane.b32.xlu0 %v2520_v11, %s2540_s3 }
0x20e6   :  { %v1594_v14 = vpop.permute.xlu0 %1593 }
0x20e7   :  { %v1596_v15 = vmul.f32 %v1594_v14, %v1579_v63 }
0x20e9   :  { %1598 = vrot.lane.b32.xlu1 %v1596_v15, %s2541_s23 }
0x215b   :  { %v1599_v16 = vpop.permute.xlu1 %1598 }
0x215c   :  { %2319 = vmatmul.mubr.msk.f32.vlgmr.msra.gmra.mrb[16].mxu1 %vm191_vm6, %v1599_v16 }
0x215d   :  { %2454 = vmatpush3.bf16.msra.mxu1 %v2837_v57  ;;  %2340 = vmatprep.mubr.msk.f32.mxu1 %vm2538_vm2, %v2539_v8 }
0x215e   :  { %2455 = vmatprep.subr.bf16.mxu1 %v2537_v0 }
0x2161   :  { %2457 = vmatpush3.bf16.msra.mxu1 %v2847_v60 }
0x222f   :  { %v1668_v4 = vpop.f32.mrb[16].mxu1 }
0x2230   :  { %v1672_v18 = vadd.f32 %v1668_v4, %v1094_v17  ;;  %v2320_v19 = vpop.f32.mrb[17].mxu1  ;;  %v2024_v17 = vld [vmem:[%s3036_s8] ss:$0 sm:$0xff] }
0x2232   :  { %v1673_v13 = vmul.f32 0.5, %v1672_v18 }
0x2234   :  { %v1674_v1 = vsel %vm2646_vm5, %v1672_v18, %v1673_v13 }
0x2235   :  { %2521 = vtanh.f32 %v1674_v1 }
0x223f   :  { %v2522_v21 = vpop.eup %2521 }
0x2240   :  { %v1676_v57 = vadd.f32 1.0, %v2522_v21 }
0x2242   :  { %v1677_v10 = vmul.f32 0.5, %v1676_v57 }
0x2244   :  { %v1678_v22 = vsel %vm2646_vm5, %v2522_v21, %v1677_v10 }
0x2245   :  { %1681 = vrot.lane.b32.xlu0 %v1678_v22, %s2540_s3  ;;  %v1679_v45 = vmul.f32 %v1678_v22, %v1590_v9  ;;  %v2462_v9 = vpack.c.bf16 %v1897_v7, %v1896_v20 }
0x22b7   :  { %v1682_v60 = vpop.permute.xlu0 %1681 }
0x22b8   :  { %v1684_v62 = vmul.f32 %v1682_v60, %v1678_v22 }
0x22ba   :  { %1686 = vrot.lane.b32.xlu1 %v1684_v62, %s2541_s23 }
0x232c   :  { %v1687_v43 = vpop.permute.xlu1 %1686 }
0x232d   :  { %v1689_v23 = vadd.f32 %v1687_v43, %v1679_v45 }
0x232f   :  { %2523 = vtanh.f32 %v1689_v23 }
0x2339   :  { %v2524_v24 = vpop.eup %2523 }
0x233a   :  { %1692 = vrot.lane.b32.xlu0 %v2524_v24, %s2540_s3 }
0x23ac   :  { %v1693_v25 = vpop.permute.xlu0 %1692 }
0x23ad   :  { %v1695_v26 = vmul.f32 %v1693_v25, %v1678_v22 }
0x23af   :  { %1697 = vrot.lane.b32.xlu1 %v1695_v26, %s2541_s23 }
0x2421   :  { %v1698_v28 = vpop.permute.xlu1 %1697 }
0x2422   :  { %2330 = vmatmul.mubr.msk.f32.vlgmr.msra.gmra.mrb[26].mxu0 %vm191_vm6, %v1698_v28 }
0x2423   :  { %2351 = vmatprep.mubr.msk.f32.mxu0 %vm2538_vm2, %v2539_v8  ;;  %2460 = vmatpush3.bf16.msra.mxu0 %v2459_v46 }
0x2424   :  { %2461 = vmatprep.subr.bf16.mxu0 %v2537_v0 }
0x2427   :  { %2463 = vmatpush3.bf16.msra.mxu0 %v2462_v9 }
0x24f5   :  { %v1767_v30 = vpop.f32.mrb[26].mxu0 }
0x24f6   :  { %v1771_v31 = vadd.f32 %v1767_v30, %v1099_v29  ;;  %v2331_v32 = vpop.f32.mrb[27].mxu0 }
0x24f8   :  { %v1772_v33 = vmul.f32 0.5, %v1771_v31 }
0x24fa   :  { %v1773_v34 = vsel %vm2646_vm5, %v1771_v31, %v1772_v33 }
0x24fb   :  { %2525 = vtanh.f32 %v1773_v34 }
0x2505   :  { %v2526_v36 = vpop.eup %2525 }
0x2506   :  { %v1775_v35 = vadd.f32 1.0, %v2526_v36 }
0x2508   :  { %v1776_v37 = vmul.f32 0.5, %v1775_v35 }
0x250a   :  { %v1777_v38 = vsel %vm2646_vm5, %v2526_v36, %v1776_v37 }
0x250b   :  { %1780 = vrot.lane.b32.xlu0 %v1777_v38, %s2540_s3  ;;  %v1778_v61 = vmul.f32 %v1777_v38, %v1689_v23 }
0x257d   :  { %v1781_v8 = vpop.permute.xlu0 %1780 }
0x257e   :  { %v1783_v39 = vmul.f32 %v1781_v8, %v1777_v38 }
0x2580   :  { %1785 = vrot.lane.b32.xlu1 %v1783_v39, %s2541_s23 }
0x25f2   :  { %v1786_v40 = vpop.permute.xlu1 %1785 }
0x25f3   :  { %v1788_v3 = vadd.f32 %v1786_v40, %v1778_v61 }
0x25f5   :  { %2527 = vtanh.f32 %v1788_v3 }
0x25ff   :  { %v2528_v42 = vpop.eup %2527 }
0x2600   :  { %1791 = vrot.lane.b32.xlu0 %v2528_v42, %s2540_s3 }
0x2672   :  { %v1792_v27 = vpop.permute.xlu0 %1791 }
0x2673   :  { %v1794_v44 = vmul.f32 %v1792_v27, %v1777_v38 }
0x2675   :  { %1796 = vrot.lane.b32.xlu1 %v1794_v44, %s2541_s23 }
0x26e7   :  { %v1797_v2 = vpop.permute.xlu1 %1796 }
0x26e8   :  { %2341 = vmatmul.mubr.msk.f32.vlgmr.msra.gmra.mrb[18].mxu1 %vm191_vm6, %v1797_v2 }
0x27bb   :  { %v1866_v48 = vpop.f32.mrb[18].mxu1 }
0x27bc   :  { %v1870_v49 = vadd.f32 %v1866_v48, %v1104_v47  ;;  %v2342_v50 = vpop.f32.mrb[19].mxu1 }
0x27be   :  { %v1871_v51 = vmul.f32 0.5, %v1870_v49 }
0x27c0   :  { %v1872_v52 = vsel %vm2646_vm5, %v1870_v49, %v1871_v51 }
0x27c1   :  { %2529 = vtanh.f32 %v1872_v52 }
0x27cb   :  { %v2530_v53 = vpop.eup %2529 }
0x27cc   :  { %v1874_v54 = vadd.f32 1.0, %v2530_v53 }
0x27ce   :  { %v1875_v55 = vmul.f32 0.5, %v1874_v54 }
0x27d0   :  { %v1876_v56 = vsel %vm2646_vm5, %v2530_v53, %v1875_v55 }
0x27d1   :  { %1879 = vrot.lane.b32.xlu0 %v1876_v56, %s2540_s3  ;;  %v1877_v12 = vmul.f32 %v1876_v56, %v1788_v3 }
0x2843   :  { %v1880_v41 = vpop.permute.xlu0 %1879 }
0x2844   :  { %v1882_v58 = vmul.f32 %v1880_v41, %v1876_v56 }
0x2846   :  { %1884 = vrot.lane.b32.xlu1 %v1882_v58, %s2541_s23 }
0x28b8   :  { %v1885_v59 = vpop.permute.xlu1 %1884 }
0x28b9   :  { %v1887_v63 = vadd.f32 %v1885_v59, %v1877_v12 }
0x28bb   :  { %2531 = vtanh.f32 %v1887_v63 }
0x28c5   :  { %v2532_v11 = vpop.eup %2531 }
0x28c6   :  { %1890 = vrot.lane.b32.xlu0 %v2532_v11, %s2540_s3 }
0x2938   :  { %v1891_v14 = vpop.permute.xlu0 %1890 }
0x2939   :  { %v1893_v15 = vmul.f32 %v1891_v14, %v1876_v56 }
0x293b   :  { %1906 = vrot.lane.b32.xlu1 %v1893_v15, %s2541_s23 }
0x29ad   :  { %v1907_v16 = vpop.permute.xlu1 %1906 }
0x29ae   :  { %2352 = vmatmul.mubr.msk.f32.vlgmr.msra.gmra.mrb[28].mxu0 %vm191_vm6, %v1907_v16 }
0x2a81   :  { %v1976_v4 = vpop.f32.mrb[28].mxu0 }
0x2a82   :  { %v1977_v18 = vadd.f32 %v2024_v17, %v1976_v4  ;;  %v2353_v19 = vpop.f32.mrb[29].mxu0 }
0x2a84   :  { %v2026_v13 = vmul.f32 -1.442695, %v1977_v18 }
0x2a86   :  { %2533 = vpow2.f32 %v2026_v13 }
0x2a90   :  { %v2534_v0 = vpop.eup %2533 }
0x2a91   :  { %v1983_v1 = vadd.f32 1.0, %v2534_v0 }
0x2a93   :  { %2535 = vrcp.f32 %v1983_v1 }
0x2a9d   :  { %v2536_v21 = vpop.eup %2535 }
0x2a9e   :  { %1986 = vst.msk [vmem:[%s3037_s9] sm:$0xff] %vm57_vm1, %v2536_v21 }

</bundles_post_ra>
